<compile_context>
chip_gen: v7x
topology: tpu7x:2x2x1
jax: 0.10.0
libtpu: 0.0.40
codegen_flags: <defaults>
</compile_context>

<pallas_src>
import functools

import jax
import jax.numpy as jnp
from jax.experimental import pallas as pl
from jax.experimental.pallas import tpu as pltpu


# ----------------------------- kernels ---------------------------------------

def _decoder_gather_kernel(idx_ref, zt_ref, wpt_ref, auxt_ref, o_ref,
                           *, f32_product, apply_sigmoid):
    """Transposed-orientation kernel with in-kernel (one-hot matmul) gather.

    idx_ref : [2, tile_e] int32   edge endpoints for this tile
    zt_ref  : [H, N_pad]  cdtype  node features, transposed, VMEM-resident
    wpt_ref : [H, 3H]     cdtype  packed hidden weights, transposed, resident
    auxt_ref: [H, 3]      f32     col0=[b1|b2], col1=final weight, [0,2]=final bias
    o_ref   : [1, tile_e] f32     lane-dense sigmoid/logit output
    """
    H, n_pad = zt_ref.shape
    tile_e = idx_ref.shape[1]
    zt = zt_ref[...]
    cd = zt.dtype

    # One-hot row selection (no relayout: edges on lanes, nodes on sublanes).
    rows = jax.lax.broadcasted_iota(jnp.int32, (n_pad, tile_e), 0)
    oh_i = (rows == idx_ref[0:1, :]).astype(jnp.float32).astype(cd)
    oh_j = (rows == idx_ref[1:2, :]).astype(jnp.float32).astype(cd)

    # Exact row gather via MXU (one non-zero per column, f32 accumulation).
    xit = jnp.dot(zt, oh_i, preferred_element_type=jnp.float32)   # [H, tile_e]
    xjt = jnp.dot(zt, oh_j, preferred_element_type=jnp.float32)
    xit_c = xit.astype(cd)
    xjt_c = xjt.astype(cd)
    if f32_product:                       # v5e: no bf16 VALU -> product in f32
        xpt_c = (xit * xjt).astype(cd)
    else:                                 # v6e/v7x: direct bf16 product
        xpt_c = xit_c * xjt_c

    # Hidden layer: three accumulated K=H dots (no concat temp).
    h = jnp.dot(wpt_ref[:, 0:H], xpt_c, preferred_element_type=jnp.float32)
    h += jnp.dot(wpt_ref[:, H:2 * H], xit_c, preferred_element_type=jnp.float32)
    h += jnp.dot(wpt_ref[:, 2 * H:3 * H], xjt_c, preferred_element_type=jnp.float32)
    h = jnp.maximum(h + auxt_ref[:, 0:1], 0.0)                    # + [b1|b2], ReLU

    # Final Linear(H, 1): VPU multiply + sublane reduction, then sigmoid.
    logit = jnp.sum(h * auxt_ref[:, 1:2], axis=0, keepdims=True)  # [1, tile_e]
    logit = logit + auxt_ref[0:1, 2:3]
    o_ref[...] = jax.nn.sigmoid(logit) if apply_sigmoid else logit


def _decoder_pregathered_kernel(xi_ref, xj_ref, wp_ref, aux_ref, o_ref,
                                *, f32_product, apply_sigmoid):
    """Edge-major fallback kernel for node sets too large for in-kernel gather.

    xi_ref / xj_ref : [tile_e, H] cdtype (gathered by XLA in the wrapper)
    wp_ref          : [3H, H]     cdtype packed hidden weights (resident)
    aux_ref         : [3, H]      f32    row0=[b1|b2], row1=final weight, [2,0]=bias
    o_ref           : [tile_e, 1] f32
    """
    H = wp_ref.shape[1]
    xi = xi_ref[...]
    xj = xj_ref[...]
    if f32_product:
        xprod = (xi.astype(jnp.float32) * xj.astype(jnp.float32)).astype(xi.dtype)
    else:
        xprod = xi * xj

    h = jnp.dot(xprod, wp_ref[0:H, :], preferred_element_type=jnp.float32)
    h += jnp.dot(xi, wp_ref[H:2 * H, :], preferred_element_type=jnp.float32)
    h += jnp.dot(xj, wp_ref[2 * H:3 * H, :], preferred_element_type=jnp.float32)
    h = jnp.maximum(h + aux_ref[0:1, :], 0.0)

    logit = jnp.sum(h * aux_ref[1:2, :], axis=-1, keepdims=True)  # [tile_e, 1]
    logit = logit + aux_ref[2:3, 0:1]
    o_ref[...] = jax.nn.sigmoid(logit) if apply_sigmoid else logit


# ----------------------------- tiling helpers ---------------------------------

def _round_up(x, m):
    return ((x + m - 1) // m) * m


def _device_tuning():
    """Returns (vmem budget for auto-tiling, max edge tile, f32 product flag)."""
    try:
        kind = jax.devices()[0].device_kind.lower()
    except Exception:
        kind = ""
    newer = any(t in kind for t in ("v6", "v7", "7x"))
    if newer:
        # v6e / v7x: 32 MiB default scoped VMEM, bf16 VALU available.
        return 20 << 20, 8192, False
    # v5e and older / unknown: 16 MiB default scoped VMEM, no bf16 VALU.
    return 12 << 20, 2048, True


def _pick_tile_gather(E, H, n_pad, itemsize, budget, cap):
    tile = cap
    while tile > 128 and tile // 2 >= max(E, 1):
        tile //= 2
    while tile > 128:
        est = (2 * 2 * 8 * tile * 4              # idx + output blocks (dbuf, padded)
               + 2 * n_pad * H * itemsize        # resident z.T
               + 2 * n_pad * tile * itemsize     # one-hot temps
               + 2 * H * tile * 4                # gathered x_i/x_j (f32 acc)
               + 3 * H * tile * itemsize         # narrowed copies + product
               + H * tile * 4                    # hidden activations (f32)
               + 2 * 3 * H * H * itemsize)       # packed weight
        if est <= budget:
            break
        tile //= 2
    return tile


def _pick_tile_pregathered(E, H, itemsize, budget, cap):
    h_pad = _round_up(H, 128)
    tile = cap
    while tile > 128 and tile // 2 >= max(E, 1):
        tile //= 2
    while tile > 128:
        est = (2 * 2 * tile * h_pad * itemsize   # x_i, x_j (dbuf)
               + 2 * tile * 128 * 4              # output tile (lane padded, dbuf)
               + tile * h_pad * (itemsize + 4)   # product + hidden temps
               + 2 * (3 * H + 8) * h_pad * 4)    # packed weight + aux
        if est <= budget:
            break
        tile //= 2
    return tile


# ----------------------------- forward wrapper --------------------------------

def variational_decoder_forward(z, edge_index, params, *, sigmoid=True,
                                tile_e=None, compute_dtype=jnp.bfloat16,
                                gather_in_kernel=None, max_gather_nodes=256):
    """z: [N, H] float32, edge_index: [2, E] int. Returns [E, 1] float32."""
    N, H = z.shape
    E = edge_index.shape[1]
    cdtype = jnp.dtype(compute_dtype)
    itemsize = cdtype.itemsize
    budget, cap, f32_product = _device_tuning()
    if cdtype == jnp.dtype(jnp.float32):
        f32_product = True

    n_pad = max(128, _round_up(N, 128))
    if gather_in_kernel is None:
        gather_in_kernel = n_pad <= max_gather_nodes

    edge_index = edge_index.astype(jnp.int32)
    z_c = z.astype(cdtype)

    if gather_in_kernel:
        # ---------- in-kernel gather path (z resident in VMEM) --------------
        if tile_e is None:
            tile_e = _pick_tile_gather(E, H, n_pad, itemsize, budget, cap)
        tile_e = max(128, _round_up(tile_e, 128))
        n_tiles = pl.cdiv(E, tile_e)
        E_pad = n_tiles * tile_e
        if E_pad != E:
            edge_index = jnp.pad(edge_index, ((0, 0), (0, E_pad - E)))
        if n_pad != N:
            z_c = jnp.pad(z_c, ((0, n_pad - N), (0, 0)))
        zt = z_c.T                                      # [H, n_pad]
        wpt = params["wpt"].astype(cdtype)              # [H, 3H]
        auxt = params["auxt"].astype(jnp.float32)       # [H, 3]

        kernel = functools.partial(_decoder_gather_kernel,
                                   f32_product=f32_product,
                                   apply_sigmoid=sigmoid)
        full = lambda shape: pl.BlockSpec(shape, lambda e: (0, 0))
        out = pl.pallas_call(
            kernel,
            out_shape=jax.ShapeDtypeStruct((1, E_pad), jnp.float32),
            grid_spec=pltpu.PrefetchScalarGridSpec(
                num_scalar_prefetch=0,
                grid=(n_tiles,),
                in_specs=[
                    pl.BlockSpec((2, tile_e), lambda e: (0, e)),   # edge indices
                    full((H, n_pad)),                              # z.T (resident)
                    full((H, 3 * H)),                              # packed weight.T
                    full((H, 3)),                                  # biases / final row
                ],
                out_specs=pl.BlockSpec((1, tile_e), lambda e: (0, e)),  # lane-dense
            ),
            compiler_params=pltpu.CompilerParams(
                dimension_semantics=("parallel",)),
        )(edge_index, zt, wpt, auxt)
        return out[0, :E][:, None]

    # ---------- fallback: pre-gathered edge-major path (large node sets) ----
    if tile_e is None:
        tile_e = _pick_tile_pregathered(E, H, itemsize, budget, cap)
    tile_e = max(128, _round_up(tile_e, 128))
    n_tiles = pl.cdiv(E, tile_e)
    E_pad = n_tiles * tile_e
    if E_pad != E:
        # Pad the cheap int32 index array (node 0 is valid); rows dropped at end.
        edge_index = jnp.pad(edge_index, ((0, 0), (0, E_pad - E)))
    x_i = z_c[edge_index[0]]                            # [E_pad, H]
    x_j = z_c[edge_index[1]]
    wp = params["wp"].astype(cdtype)                    # [3H, H]
    aux = params["aux"].astype(jnp.float32)             # [3, H]

    kernel = functools.partial(_decoder_pregathered_kernel,
                               f32_product=f32_product,
                               apply_sigmoid=sigmoid)
    edge_spec = pl.BlockSpec((tile_e, H), lambda e: (e, 0))
    full = lambda shape: pl.BlockSpec(shape, lambda e: (0, 0))
    out = pl.pallas_call(
        kernel,
        out_shape=jax.ShapeDtypeStruct((E_pad, 1), jnp.float32),
        grid_spec=pltpu.PrefetchScalarGridSpec(
            num_scalar_prefetch=0,
            grid=(n_tiles,),
            in_specs=[edge_spec, edge_spec, full((3 * H, H)), full((3, H))],
            out_specs=pl.BlockSpec((tile_e, 1), lambda e: (e, 0)),
        ),
        compiler_params=pltpu.CompilerParams(
            dimension_semantics=("parallel",)),
    )(x_i, x_j, wp, aux)
    return out[:E]


# ----------------------------- parameters ------------------------------------

def _xavier_uniform(key, fan_out, fan_in):
    bound = (6.0 / (fan_in + fan_out)) ** 0.5
    return jax.random.uniform(key, (fan_out, fan_in), jnp.float32, -bound, bound)


def _linear_bias(key, fan_in, fan_out):
    bound = 1.0 / (fan_in ** 0.5)
    return jax.random.uniform(key, (1, fan_out), jnp.float32, -bound, bound)


def make_raw_params(key, hidden_channels):
    """Torch-layout parameters of the module (weight stored as [out, in])."""
    H = hidden_channels
    Hh = H // 2
    k = jax.random.split(key, 6)
    return dict(
        w1=_xavier_uniform(k[0], Hh, H),          # lins[0]:    Linear(H,  H//2)
        b1=_linear_bias(k[1], H, Hh),
        w2=_xavier_uniform(k[2], Hh, 2 * H),      # lins2[0]:   Linear(2H, H//2)
        b2=_linear_bias(k[3], 2 * H, Hh),
        wf=_xavier_uniform(k[4], 1, H),           # lins_final: Linear(H, 1)
        bf=_linear_bias(k[5], H, 1),
    )


def pack_params(raw, hidden_channels):
    """Pack the three Linears so concat([x_i*x_j, x_i, x_j]) @ wp = [h1 | h2]."""
    H = hidden_channels
    Hh = H // 2
    wp = jnp.zeros((3 * H, H), jnp.float32)
    wp = wp.at[0:H, 0:Hh].set(raw["w1"].T)
    wp = wp.at[H:2 * H, Hh:H].set(raw["w2"][:, :H].T)
    wp = wp.at[2 * H:3 * H, Hh:H].set(raw["w2"][:, H:].T)
    aux = jnp.zeros((3, H), jnp.float32)
    aux = aux.at[0, :].set(jnp.concatenate([raw["b1"], raw["b2"]], axis=1)[0])
    aux = aux.at[1, :].set(raw["wf"][0])
    aux = aux.at[2, 0].set(raw["bf"][0, 0])
    return {"wp": wp, "aux": aux, "wpt": wp.T, "auxt": aux.T}


def reference_forward(z, edge_index, raw, sigmoid=True):
    """Plain-JAX mirror of the PyTorch module (eval mode)."""
    x_i = z[edge_index[0]]
    x_j = z[edge_index[1]]
    x_dot = jnp.maximum((x_i * x_j) @ raw["w1"].T + raw["b1"], 0.0)
    x_pair = jnp.concatenate([x_i, x_j], axis=1)
    x_pair = jnp.maximum(x_pair @ raw["w2"].T + raw["b2"], 0.0)
    x = jnp.concatenate([x_dot, x_pair], axis=1) @ raw["wf"].T + raw["bf"]
    return jax.nn.sigmoid(x) if sigmoid else x


# ----------------------------- demo / tests ----------------------------------

if __name__ == "__main__":
    key = jax.random.PRNGKey(0)
    k_z, k_e, k_p = jax.random.split(key, 3)

    N = 64       # number of nodes (small -> exercises in-kernel gather path)
    H = 128      # hidden_channels (Hh = 64)
    E = 1000     # number of edges (non-multiple of tile -> exercises padding)

    z = jax.random.normal(k_z, (N, H), jnp.float32)
    edge_index = jax.random.randint(k_e, (2, E), 0, N, jnp.int32)
    raw = make_raw_params(k_p, H)
    params = pack_params(raw, H)
    ref = reference_forward(z, edge_index, raw)
    ref_logits = reference_forward(z, edge_index, raw, sigmoid=False)

    # 1) In-kernel gather, f32, small explicit tile -> multi-step grid + padding.
    out1 = variational_decoder_forward(z, edge_index, params, tile_e=256,
                                       compute_dtype=jnp.float32,
                                       gather_in_kernel=True)
    out1 = jax.block_until_ready(out1)
    assert out1.shape == (E, 1)
    assert jnp.allclose(out1, ref, atol=5e-5, rtol=1e-4), "gather f32 mismatch"

    # 2) In-kernel gather, bf16 MXU operands, auto tile.
    out2 = variational_decoder_forward(z, edge_index, params,
                                       compute_dtype=jnp.bfloat16,
                                       gather_in_kernel=True)
    out2 = jax.block_until_ready(out2)
    assert out2.shape == (E, 1)
    assert float(jnp.max(jnp.abs(out2 - ref))) < 5e-2, "gather bf16 mismatch"

    # 3) Pre-gathered fallback path (large-N regime), f32.
    out3 = variational_decoder_forward(z, edge_index, params, tile_e=512,
                                       compute_dtype=jnp.float32,
                                       gather_in_kernel=False)
    out3 = jax.block_until_ready(out3)
    assert out3.shape == (E, 1)
    assert jnp.allclose(out3, ref, atol=5e-5, rtol=1e-4), "fallback f32 mismatch"

    # 4) Pre-gathered fallback, bf16, auto tile.
    out4 = variational_decoder_forward(z, edge_index, params,
                                       compute_dtype=jnp.bfloat16,
                                       gather_in_kernel=False)
    out4 = jax.block_until_ready(out4)
    assert out4.shape == (E, 1)
    assert float(jnp.max(jnp.abs(out4 - ref))) < 5e-2, "fallback bf16 mismatch"

    # 5) sigmoid=False returns raw logits (API parity with the torch module).
    logits = variational_decoder_forward(z, edge_index, params, sigmoid=False,
                                         compute_dtype=jnp.float32)
    logits = jax.block_until_ready(logits)
    assert logits.shape == (E, 1)
    assert jnp.allclose(logits, ref_logits, atol=5e-4, rtol=5e-4), "logit mismatch"

    print("KERNEL_OK")
</pallas_src>

<mosaic_0001>
module attributes {stable_mosaic.version = 11 : i64} {
  func.func @_decoder_gather_kernel(%arg0: i32, %arg1: memref<2x256xi32, #tpu.memory_space<vmem>>, %arg2: memref<128x128xf32, #tpu.memory_space<vmem>>, %arg3: memref<128x384xf32, #tpu.memory_space<vmem>>, %arg4: memref<128x3xf32, #tpu.memory_space<vmem>>, %arg5: memref<1x256xf32, #tpu.memory_space<vmem>>) attributes {dimension_semantics = [#tpu.dimension_semantics<parallel>], iteration_bounds = array<i64: 4>, scalar_prefetch = 0 : i64, scratch_operands = 0 : i64, tpu.core_type = #tpu.core_type<tc>, window_params = [{transform_indices = @transform_0, window_bounds = array<i64: 2, 256>}, {pipeline_mode = #tpu.pipeline_mode<synchronous>, transform_indices = @transform_1, window_bounds = array<i64: 128, 128>}, {pipeline_mode = #tpu.pipeline_mode<synchronous>, transform_indices = @transform_2, window_bounds = array<i64: 128, 384>}, {pipeline_mode = #tpu.pipeline_mode<synchronous>, transform_indices = @transform_3, window_bounds = array<i64: 128, 3>}, {transform_indices = @transform_4, window_bounds = array<i64: 1, 256>}]} {
    %c0 = arith.constant 0 : index
    %c0_0 = arith.constant 0 : index
    %0 = vector.load %arg2[%c0, %c0_0] : memref<128x128xf32, #tpu.memory_space<vmem>>, vector<128x128xf32>
    %1 = tpu.iota {dimensions = array<i32: 0>} : vector<128x256xi32>
    %c0_1 = arith.constant 0 : index
    %c0_2 = arith.constant 0 : index
    %2 = vector.load %arg1[%c0_1, %c0_2] : memref<2x256xi32, #tpu.memory_space<vmem>>, vector<1x256xi32>
    %3 = vector.broadcast %2 : vector<1x256xi32> to vector<128x256xi32>
    %4 = arith.cmpi eq, %1, %3 : vector<128x256xi32>
    %5 = arith.extui %4 : vector<128x256xi1> to vector<128x256xi32>
    %6 = arith.sitofp %5 : vector<128x256xi32> to vector<128x256xf32>
    %c1 = arith.constant 1 : index
    %c0_3 = arith.constant 0 : index
    %7 = vector.load %arg1[%c1, %c0_3] : memref<2x256xi32, #tpu.memory_space<vmem>>, vector<1x256xi32>
    %8 = vector.broadcast %7 : vector<1x256xi32> to vector<128x256xi32>
    %9 = arith.cmpi eq, %1, %8 : vector<128x256xi32>
    %10 = arith.extui %9 : vector<128x256xi1> to vector<128x256xi32>
    %11 = arith.sitofp %10 : vector<128x256xi32> to vector<128x256xf32>
    %cst = arith.constant dense<0.000000e+00> : vector<128x256xf32>
    %12 = tpu.matmul %0, %6, %cst {dimension_numbers = #tpu.dot_dimension_numbers<[1], [0], [0], [1], [0, 0, 1, 1], [], []>} : vector<128x128xf32>, vector<128x256xf32>, vector<128x256xf32> -> vector<128x256xf32>
    %cst_4 = arith.constant dense<0.000000e+00> : vector<128x256xf32>
    %13 = tpu.matmul %0, %11, %cst_4 {dimension_numbers = #tpu.dot_dimension_numbers<[1], [0], [0], [1], [0, 0, 1, 1], [], []>} : vector<128x128xf32>, vector<128x256xf32>, vector<128x256xf32> -> vector<128x256xf32>
    %14 = arith.mulf %12, %13 : vector<128x256xf32>
    %c0_5 = arith.constant 0 : index
    %c0_6 = arith.constant 0 : index
    %15 = vector.load %arg3[%c0_5, %c0_6] : memref<128x384xf32, #tpu.memory_space<vmem>>, vector<128x128xf32>
    %cst_7 = arith.constant dense<0.000000e+00> : vector<128x256xf32>
    %16 = tpu.matmul %15, %14, %cst_7 {dimension_numbers = #tpu.dot_dimension_numbers<[1], [0], [0], [1], [0, 0, 1, 1], [], []>} : vector<128x128xf32>, vector<128x256xf32>, vector<128x256xf32> -> vector<128x256xf32>
    %c0_8 = arith.constant 0 : index
    %c128 = arith.constant 128 : index
    %17 = vector.load %arg3[%c0_8, %c128] : memref<128x384xf32, #tpu.memory_space<vmem>>, vector<128x128xf32>
    %cst_9 = arith.constant dense<0.000000e+00> : vector<128x256xf32>
    %18 = tpu.matmul %17, %12, %cst_9 {dimension_numbers = #tpu.dot_dimension_numbers<[1], [0], [0], [1], [0, 0, 1, 1], [], []>} : vector<128x128xf32>, vector<128x256xf32>, vector<128x256xf32> -> vector<128x256xf32>
    %19 = arith.addf %16, %18 : vector<128x256xf32>
    %c0_10 = arith.constant 0 : index
    %c256 = arith.constant 256 : index
    %20 = vector.load %arg3[%c0_10, %c256] : memref<128x384xf32, #tpu.memory_space<vmem>>, vector<128x128xf32>
    %cst_11 = arith.constant dense<0.000000e+00> : vector<128x256xf32>
    %21 = tpu.matmul %20, %13, %cst_11 {dimension_numbers = #tpu.dot_dimension_numbers<[1], [0], [0], [1], [0, 0, 1, 1], [], []>} : vector<128x128xf32>, vector<128x256xf32>, vector<128x256xf32> -> vector<128x256xf32>
    %22 = arith.addf %19, %21 : vector<128x256xf32>
    %c0_12 = arith.constant 0 : index
    %c0_13 = arith.constant 0 : index
    %23 = vector.load %arg4[%c0_12, %c0_13] : memref<128x3xf32, #tpu.memory_space<vmem>>, vector<128x1xf32>
    %24 = vector.broadcast %23 : vector<128x1xf32> to vector<128x256xf32>
    %25 = arith.addf %22, %24 : vector<128x256xf32>
    %cst_14 = arith.constant 0.000000e+00 : f32
    %26 = vector.broadcast %cst_14 : f32 to vector<128x256xf32>
    %27 = arith.maximumf %25, %26 : vector<128x256xf32>
    %c0_15 = arith.constant 0 : index
    %c1_16 = arith.constant 1 : index
    %28 = vector.load %arg4[%c0_15, %c1_16] : memref<128x3xf32, #tpu.memory_space<vmem>>, vector<128x1xf32>
    %29 = vector.broadcast %28 : vector<128x1xf32> to vector<128x256xf32>
    %30 = arith.mulf %27, %29 : vector<128x256xf32>
    %cst_17 = arith.constant dense<0.000000e+00> : vector<256xf32>
    %31 = vector.multi_reduction <add>, %30, %cst_17 [0] : vector<128x256xf32> to vector<256xf32>
    %32 = vector.shape_cast %31 : vector<256xf32> to vector<1x256xf32>
    %c0_18 = arith.constant 0 : index
    %c2 = arith.constant 2 : index
    %33 = vector.load %arg4[%c0_18, %c2] : memref<128x3xf32, #tpu.memory_space<vmem>>, vector<1x1xf32>
    %34 = vector.broadcast %33 : vector<1x1xf32> to vector<1x256xf32>
    %35 = arith.addf %32, %34 : vector<1x256xf32>
    %36 = arith.negf %35 : vector<1x256xf32>
    %37 = math.exp %36 : vector<1x256xf32>
    %cst_19 = arith.constant 1.000000e+00 : f32
    %38 = vector.broadcast %cst_19 : f32 to vector<1x256xf32>
    %39 = arith.addf %38, %37 : vector<1x256xf32>
    %40 = arith.divf %38, %39 : vector<1x256xf32>
    %c0_20 = arith.constant 0 : index
    %c0_21 = arith.constant 0 : index
    %41 = vector.load %arg5[%c0_20, %c0_21] : memref<1x256xf32, #tpu.memory_space<vmem>>, vector<1x256xf32>
    tpu.vector_store %arg5[%c0_20, %c0_21], %40 {strides = array<i32>} : memref<1x256xf32, #tpu.memory_space<vmem>>, vector<1x256xf32>,
    return
  }
  func.func @transform_0(%arg0: i32) -> (i32, i32) {
    %c0_i32 = arith.constant 0 : i32
    %c0_i32_0 = arith.constant 0 : i32
    return %c0_i32, %arg0 : i32, i32
  }
  func.func @transform_1(%arg0: i32) -> (i32, i32) {
    %c0_i32 = arith.constant 0 : i32
    %c0_i32_0 = arith.constant 0 : i32
    %c0_i32_1 = arith.constant 0 : i32
    return %c0_i32, %c0_i32_0 : i32, i32
  }
  func.func @transform_2(%arg0: i32) -> (i32, i32) {
    %c0_i32 = arith.constant 0 : i32
    %c0_i32_0 = arith.constant 0 : i32
    %c0_i32_1 = arith.constant 0 : i32
    return %c0_i32, %c0_i32_0 : i32, i32
  }
  func.func @transform_3(%arg0: i32) -> (i32, i32) {
    %c0_i32 = arith.constant 0 : i32
    %c0_i32_0 = arith.constant 0 : i32
    %c0_i32_1 = arith.constant 0 : i32
    return %c0_i32, %c0_i32_0 : i32, i32
  }
  func.func @transform_4(%arg0: i32) -> (i32, i32) {
    %c0_i32 = arith.constant 0 : i32
    %c0_i32_0 = arith.constant 0 : i32
    return %c0_i32, %arg0 : i32, i32
  }
}

</mosaic_0001>

<bundles_post_ra>
// kernel: tpu_custom_call.1
= control target key start
LH: loop header
LB: loop body
LE: loop exit
PB: predicated region body
PF: predicated region fallthrough
CT: control target
= control target key end

     0   :  { %9 = vsyncpa [#allocation3], 0  ;;  %s3450_s0 = inlined_call_operand.hbm [shape: s32[2,1024], index: 0, kind: input, shape index: {}]   ;;  %s3451_s1 = inlined_call_operand.vmem [shape: f32[128,128], index: 1, kind: input, shape index: {}]   ;;  %s3452_s2 = inlined_call_operand.hbm [shape: f32[128,384], index: 2, kind: input, shape index: {}]   ;;  %s3453_s3 = inlined_call_operand.vmem [shape: f32[128,3], index: 3, kind: input, shape index: {}]   ;;  %s3454_s4 = inlined_call_operand.hbm [shape: f32[1,1024], index: 4, kind: output, shape index: {}]  }
   0x1   :  { %11 = vsyncpa [#allocation3 + $0x1], 0 }
   0x2   :  { %12 = vsyncpa [#allocation6], 0 }
   0x3   :  { %13 = vsyncpa [#allocation4], 0 }
   0x4   :  { %15 = vsyncpa [#allocation4 + $0x1], 0  ;;  %s2464_s15 = smov 0   ;;  %s2466_s16 = smov 0  }
   0x5   :  { %s2468_s17 = smov 0   ;;  %s2470_s18 = smov 0  }
   0x6 LB: > { %s2485_s19 = sadd.s32 4294967295, %s2426_s18   ;;  %s1828_s20 = sadd.s32 4294967294, %s2426_s18   ;;  %s2426_s18 = sphi %s2470_s18, %s3475_s18   ;;  %s2422_s17 = sphi %s2468_s17, %s3474_s17   ;;  %s2418_s16 = sphi %s2466_s16, %s3473_s16   ;;  %s2414_s15 = sphi %s2464_s15, %s3472_s15  }
   0x7   : > { %p41_p0 = scmp.ne.s32.totalorder %s2418_s16, %s2414_s15  ;;  %p3455_p1 = scmp.eq.s32.totalorder %s2485_s19, 0 }
   0x8   : > { %p134_p3 = scmp.eq.s32.totalorder %s1828_s20, 3  ;;  %p1829_p5 = scmp.ge.s32.totalorder %s2426_s18, 1 }
   0x9   : > { %p2494_p4 = por %p3455_p1, %p41_p0  ;;  %p141_p7 = scmp.lt.s32.totalorder %s2426_s18, 5 }
   0xa   : > { %p2499_p6 = por %p134_p3, %p41_p0  ;;  %s2428_s24 = smov [#allocation5]  }
   0xb   : > { %s3459_s21 = scalar_select %p2494_p4, 1, 0 }
   0xc   : > { %s3460_s22 = scalar_select %p2499_p6, 1, 0 }
   0xd   : > { %p2504_p8 = pnand %p1829_p5, %p141_p7  ;;  %s156_s25 = sshll.u32 %s2428_s24, 4  ;;  %s157_s25 = int_to_ptr.vmem [resolvable:$true] %s156_s25 }
   0xe   : > { %s2517_s27 = sadd.s32 1, %s2426_s18   ;;  %s28_s28 = sadd.s32 1, %s2422_s17 }
   0xf   : > { %s3461_s23 = scalar_select %p2504_p8, 1, 0 }
  0x10   : > { %p2225_p9 = pneg %p2504_p8  ;;  %s25_s29 = ssub.s32 %s2426_s18, %s2517_s27 }
  0x11   : > { %s2298_s6 = scalar_lea.hbm %s3452_s2, 6144 }
  0x12   : > { %p2512_p10 = pnand %p2225_p9, %p3455_p1  ;;  %p2299_p11 = scmp.ne.s32.totalorder %s3452_s2, %s2298_s6 }
  0x13   : > { %p2305_p3 = scmp.lt.u32.totalorder %s2298_s6, %s3452_s2 }
  0x14   : > { %p2300_p12 = pneg %p2512_p10 }
  0x16   : > { %p2301_p13 = pnand %p2300_p12, %p2299_p11 }
  0x18   : > { %p2302_p0 = pneg %p2301_p13 }
  0x1a   : > { %p2307_p5 = pnand %p2305_p3, %p2302_p0 }
  0x1c   : > { %2310 = shalt.err (!%p2307_p5)
}
  0x1d   : > { %s2311_s11 = scalar_lea.vmem %s157_s25, 6144  ;;  %p2319_p2 = scmp.lt.s32.totalorder %s157_s25, %s157_s25 }
  0x1e   : > { %p2312_p7 = scmp.ne.s32.totalorder %s157_s25, %s2311_s11  ;;  %p2320_p6 = scmp.lt.s32.totalorder %s2311_s11, %s2311_s11 }
  0x20   : > { %p2314_p9 = pnand %p2312_p7, %p2300_p12  ;;  %p2321_p4 = por %p2320_p6, %p2319_p2 }
  0x22   : > { %p2315_p1 = pneg %p2314_p9 }
  0x24   : > { %p2322_p8 = pnand %p2321_p4, %p2315_p1 }
  0x26   : > { %2325 = shalt.err (!%p2322_p8)
}
  0x27   : > { %s2429_s12 = smov 384   ;;  %s2430_s13 = smov 24  }
  0x28   : > { %2228 = dma.hbm_to_vmem [thread:$0]  (!%p2512_p10), %s3452_s2, 6144, %s157_s25, [#allocation6], %s2429_s12, %s2429_s12, %s2430_s13  }
  0x29   : > { %p26_p11 = scmp.eq.s32.totalorder %s25_s29, 0  ;;  %p35_p2 = scmp.ne.s32.totalorder %s2422_s17, %s2418_s16 }
  0x2a   : > { %p36_p1 = scmp.eq.s32.totalorder %s2426_s18, 0  ;;  %p2238_p4 = scmp.lt.s32.totalorder %s2426_s18, 4 }
  0x2b   : > { %s2543_s24 = scalar_select %p26_p11, %s2422_s17, %s28_s28  }
  0x2c   : > { %p37_p6 = por %p36_p1, %p35_p2  ;;  %p3463_p8 = scmp.eq.s32.totalorder %s2485_s19, 3 }
  0x2d   : > { %s173_s5 = sand.u32 1, %s2422_s17   ;;  %s1975_s6 = sshll.u32 %s2426_s18, 6 }
  0x2e   : > { %p2547_p12 = por %p3463_p8, %p35_p2  ;;  %s1832_s7 = sshll.u32 %s173_s5, 2 }
  0x2f   : > { %s2556_s9 = scalar_lea.hbm %s3450_s0, %s1975_s6  ;;  %s177_s25 = scalar_lea.vmem [#allocation2], %s1832_s7 }
  0x30   : > { %s185_s28 = sshll.u32 %s177_s25, 4  ;;  %p2558_p10 = pnand %p2238_p4, %p37_p6  ;;  %s2562_s28 = int_to_ptr.vmem [resolvable:$true] %s185_s28 }
  0x31   : > { %s174_s10 = scalar_lea.sflag [#allocation3], %s173_s5  ;;  %s2326_s11 = scalar_lea.hbm %s2556_s9, 64 }
  0x32   : > { %p2327_p13 = scmp.ne.s32.totalorder %s2556_s9, %s2326_s11  ;;  %p2328_p0 = pneg %p2558_p10 }
  0x33   : > { %s2331_s14 = scalar_lea.hbm %s3450_s0, 256  ;;  %p2332_p7 = scmp.lt.u32.totalorder %s2556_s9, %s3450_s0 }
  0x34   : > { %p2329_p3 = pnand %p2328_p0, %p2327_p13  ;;  %p2333_p9 = scmp.lt.u32.totalorder %s2331_s14, %s2326_s11 }
  0x35   : > { %p2335_p2 = scmp.lt.u32.totalorder %s2326_s11, %s2556_s9 }
  0x36   : > { %p2330_p5 = pneg %p2329_p3  ;;  %p2334_p11 = por %p2333_p9, %p2332_p7 }
  0x38   : > { %p2336_p1 = por %p2335_p2, %p2334_p11 }
  0x3a   : > { %p2337_p4 = pnand %p2336_p1, %p2330_p5 }
  0x3c   : > { %2340 = shalt.err (!%p2337_p4)
}
  0x3d   : > { %s2341_s5 = scalar_lea.vmem %s2562_s28, 64  ;;  %s2431_s7 = smov [#allocation2]  }
  0x3e   : > { %p2342_p6 = scmp.ne.s32.totalorder %s2562_s28, %s2341_s5  ;;  %s2346_s26 = sshll.u32 %s2431_s7, 4  ;;  %s2347_s26 = int_to_ptr.vmem [resolvable:$false] %s2346_s26 }
  0x3f   : > { %s2348_s8 = scalar_lea.vmem %s2347_s26, 128  ;;  %p2349_p3 = scmp.lt.s32.totalorder %s2562_s28, %s2347_s26 }
  0x40   : > { %p2344_p8 = pnand %p2342_p6, %p2328_p0  ;;  %p2350_p7 = scmp.lt.s32.totalorder %s2348_s8, %s2341_s5 }
  0x42   : > { %p2345_p13 = pneg %p2344_p8  ;;  %p2351_p9 = por %p2350_p7, %p2349_p3 }
  0x44   : > { %p2352_p11 = pnand %p2351_p9, %p2345_p13 }
  0x46   : > { %2355 = shalt.err (!%p2352_p11)
}
  0x47   : > { %2232 = dma.hbm_to_vmem [thread:$0]  (!%p2558_p10), %s2556_s9, 64, %s2562_s28, %s174_s10  }
  0x48   : > { %p3466_p5 = scmp.ne.s32.totalorder %s3461_s23, 0 }
  0x49   : > { %s2592_s25 = sand.u32 (!%p3466_p5), 1, %s2418_s16   ;;  %p3467_p0 = scmp.ne.s32.totalorder (!%p3466_p5), %s3459_s21, 0 }
  0x4a   : > { %194 = sbr.rel (%p3466_p5) target bundleno = 879 (0x36f), region = 36  ;;  %s1836_s11 = sshll.u32 (!%p3466_p5), %s2592_s25, 2 }
  0x4b   : > { %s197_s12 = scalar_lea.sflag (!%p3466_p5), [#allocation3], %s2592_s25  ;;  %s2596_s13 = scalar_lea.vmem (!%p3466_p5), [#allocation2], %s1836_s11 }
  0x51   : > { %2401 = dma.done.wait (%p3467_p0), %s197_s12, 64  }
  0x52   : > { %2403 = vsyncadd (%p3467_p0), %s197_s12, 4294967232  ;;  %p3468_p10 = scmp.eq.s32.totalorder %s2485_s19, 0 }
  0x54   : > { %2405 = dma.done.wait (%p3468_p10), [#allocation6], 6144   ;;  %p3469_p2 = pmov %p3468_p10 }
  0x55   : > { %v3458_v0 = vlaneseq  ;;  %v2432_v1 = vmov 0.0   ;;  %v264_v6 = vld [vmem:[%s2596_s13] ss:$2 sm:$0x3]  ;;  %v2433_v13 = vmov 1.0|1.0  }
  0x56   : > { %2407 = vsyncadd (%p3469_p2), [#allocation6], 4294961152  ;;  %539 = vmatprep.mubr.f32.mxu1 %v2432_v1  ;;  %925 = vmatprep.mubr.f32.mxu0 %v2432_v1  ;;  %v1871_v24 = vld [vmem:[%s2596_s13 + $0x1] ss:$2 sm:$0x3]  ;;  %v2788_v28 = vld [vmem:[%s3451_s1 + $0x8] sm:$0xff] }
  0x57   : > { %v2609_v2 = vshrl.u32 %v3458_v0, 7  ;;  %v2771_v27 = vld [vmem:[%s3451_s1] sm:$0xff]  ;;  %v2804_v29 = vld [vmem:[%s3451_s1 + $0x10] sm:$0xff]  ;;  %v2821_v30 = vld [vmem:[%s3451_s1 + $0x18] sm:$0xff]  ;;  %s1838_s9 = sshll.u32 %s2592_s25, 1  ;;  %s1976_s28 = sshll.u32 %s2485_s19, 5 }
  0x58   : > { %v2838_v31 = vld [vmem:[%s3451_s1 + $0x20] sm:$0xff]  ;;  %v236_v32 = vld [vmem:[%s3451_s1 + $0x28] sm:$0xff]  ;;  %v237_v33 = vld [vmem:[%s3451_s1 + $0x30] sm:$0xff]  ;;  %s228_s29 = scalar_lea.vmem [#allocation7], %s1838_s9  ;;  %s3407_s6 = scalar_lea.hbm %s3454_s4, %s1976_s28 }
  0x59   : > { %v271_v3 = vsub.s32 1, %v2609_v2  ;;  %v267_v4 = vsub.s32 0, %v2609_v2  ;;  %v2614_v5 = vadd.s32 8, %v2609_v2  ;;  %v2618_v7 = vadd.s32 16, %v2609_v2  ;;  %v238_v34 = vld [vmem:[%s3451_s1 + $0x38] sm:$0xff]  ;;  %v239_v35 = vld [vmem:[%s3451_s1 + $0x40] sm:$0xff] }
  0x5a   : > { %v2621_v8 = vadd.s32 24, %v2609_v2  ;;  %v2632_v11 = vadd.s32 32, %v2609_v2  ;;  %v2635_v12 = vadd.s32 40, %v2609_v2  ;;  %v2659_v14 = vadd.s32 48, %v2609_v2  ;;  %v240_v36 = vld [vmem:[%s3451_s1 + $0x48] sm:$0xff]  ;;  %v241_v37 = vld [vmem:[%s3451_s1 + $0x50] sm:$0xff] }
  0x5b   : > { %v2625_v9 = vrot.slane %v264_v6, %v271_v3  ;;  %v2629_v10 = vrot.slane %v264_v6, %v267_v4  ;;  %v2662_v15 = vadd.s32 56, %v2609_v2  ;;  %v2675_v16 = vadd.s32 64, %v2609_v2  ;;  %v242_v38 = vld [vmem:[%s3451_s1 + $0x58] sm:$0xff]  ;;  %v243_v39 = vld [vmem:[%s3451_s1 + $0x60] sm:$0xff]  ;;  %v244_v40 = vld [vmem:[%s3451_s1 + $0x68] sm:$0xff]  ;;  %s1748_s10 = sshll.u32 %s228_s29, 4  ;;  %s3409_s10 = int_to_ptr.vmem [resolvable:$true] %s1748_s10 }
  0x5c   : > { %v2678_v17 = vadd.s32 72, %v2609_v2  ;;  %v2691_v18 = vadd.s32 80, %v2609_v2  ;;  %v2694_v19 = vadd.s32 88, %v2609_v2  ;;  %v2707_v20 = vadd.s32 96, %v2609_v2  ;;  %v245_v41 = vld [vmem:[%s3451_s1 + $0x70] sm:$0xff]  ;;  %v246_v42 = vld [vmem:[%s3451_s1 + $0x78] sm:$0xff] }
  0x5d   : > { %vm274_vm0 = vcmp.eq.s32.totalorder %v2609_v2, %v2625_v9  ;;  %vm276_vm1 = vcmp.eq.s32.totalorder %v2614_v5, %v2625_v9  ;;  %vm273_vm2 = vcmp.eq.s32.totalorder %v2609_v2, %v2629_v10  ;;  %vm275_vm3 = vcmp.eq.s32.totalorder %v2614_v5, %v2629_v10  ;;  %s1734_s5 = scalar_lea.sflag [#allocation4], %s2592_s25  ;;  %s2356_s7 = scalar_lea.vmem %s3409_s10, 32 }
  0x5e   : > { %vm1977_vm4 = vmpackc.low %vm276_vm1, %vm274_vm0  ;;  %vm278_vm5 = vcmp.eq.s32.totalorder %v2618_v7, %v2625_v9  ;;  %vm280_vm6 = vcmp.eq.s32.totalorder %v2621_v8, %v2625_v9  ;;  %vm277_vm7 = vcmp.eq.s32.totalorder %v2618_v7, %v2629_v10  ;;  %vm279_vm8 = vcmp.eq.s32.totalorder %v2621_v8, %v2629_v10  ;;  %p2357_p1 = scmp.ne.s32.totalorder %s3409_s10, %s2356_s7  ;;  %s2438_s19 = smov [#allocation7]  }
  0x5f   : > { %1978 = vmatprep.subr.msk.bf16.mxu1 %vm1977_vm4, %v2433_v13  ;;  %vm1979_vm9 = vmpackc.low %vm275_vm3, %vm273_vm2  ;;  %vm282_vm10 = vcmp.eq.s32.totalorder %v2632_v11, %v2625_v9  ;;  %vm284_vm11 = vcmp.eq.s32.totalorder %v2635_v12, %v2625_v9  ;;  %vm281_vm15 = vcmp.eq.s32.totalorder %v2632_v11, %v2629_v10  ;;  %vm283_vm0 = vcmp.eq.s32.totalorder %v2635_v12, %v2629_v10  ;;  %s2360_s26 = sshll.u32 %s2438_s19, 4  ;;  %s2361_s26 = int_to_ptr.vmem [resolvable:$false] %s2360_s26 }
  0x60   : > { %1980 = vmatpush1.bf16.msk.msra.mxu1 %vm1979_vm9, %v2433_v13  ;;  %vm1981_vm12 = vmpackc.low %vm280_vm6, %vm278_vm5  ;;  %vm286_vm1 = vcmp.eq.s32.totalorder %v2659_v14, %v2625_v9  ;;  %vm288_vm2 = vcmp.eq.s32.totalorder %v2662_v15, %v2625_v9  ;;  %vm285_vm5 = vcmp.eq.s32.totalorder %v2659_v14, %v2629_v10  ;;  %vm287_vm6 = vcmp.eq.s32.totalorder %v2662_v15, %v2629_v10  ;;  %p2358_p4 = pnand %p2357_p1, %p2547_p12  ;;  %s2362_s8 = scalar_lea.vmem %s2361_s26, 64 }
  0x61   : > { %1982 = vmatprep.subr.msk.bf16.mxu1 %vm1981_vm12, %v2433_v13  ;;  %vm1983_vm13 = vmpackc.low %vm279_vm8, %vm277_vm7  ;;  %vm290_vm7 = vcmp.eq.s32.totalorder %v2675_v16, %v2625_v9  ;;  %vm292_vm8 = vcmp.eq.s32.totalorder %v2678_v17, %v2625_v9  ;;  %vm291_vm12 = vcmp.eq.s32.totalorder %v2678_v17, %v2629_v10  ;;  %v2710_v21 = vadd.s32 104, %v2609_v2  ;;  %p2363_p8 = scmp.lt.s32.totalorder %s3409_s10, %s2361_s26  ;;  %p2364_p13 = scmp.lt.s32.totalorder %s2362_s8, %s2356_s7 }
  0x62   : > { %vm1985_vm14 = vmpackc.low %vm284_vm11, %vm282_vm10  ;;  %vm289_vm11 = vcmp.eq.s32.totalorder %v2675_v16, %v2629_v10  ;;  %v2723_v22 = vadd.s32 112, %v2609_v2  ;;  %v2726_v23 = vadd.s32 120, %v2609_v2  ;;  %v2741_v25 = vrot.slane %v1871_v24, %v271_v3  ;;  %p2359_p6 = pneg %p2358_p4 }
  0x63   : > { %vm1987_vm3 = vmpackc.low %vm283_vm0, %vm281_vm15  ;;  %v2751_v26 = vrot.slane %v1871_v24, %v267_v4  ;;  %p2365_p3 = por %p2364_p13, %p2363_p8 }
  0x64   : > { %1984 = vmatpush1.bf16.msk.msra.mxu1 %vm1983_vm13, %v2433_v13  ;;  %vm1989_vm4 = vmpackc.low %vm288_vm2, %vm286_vm1  ;;  %vm294_vm13 = vcmp.eq.s32.totalorder %v2691_v18, %v2625_v9  ;;  %vm293_vm1 = vcmp.eq.s32.totalorder %v2691_v18, %v2629_v10  ;;  %vm295_vm2 = vcmp.eq.s32.totalorder %v2694_v19, %v2629_v10 }
  0x65   : > { %1986 = vmatprep.subr.msk.bf16.mxu1 %vm1985_vm14, %v2433_v13  ;;  %vm1991_vm9 = vmpackc.low %vm287_vm6, %vm285_vm5  ;;  %vm296_vm14 = vcmp.eq.s32.totalorder %v2694_v19, %v2625_v9  ;;  %p2366_p7 = pnand %p2365_p3, %p2359_p6 }
  0x66   : > { %vm1993_vm10 = vmpackc.low %vm292_vm8, %vm290_vm7  ;;  %vm297_vm7 = vcmp.eq.s32.totalorder %v2707_v20, %v2629_v10  ;;  %vm299_vm8 = vcmp.eq.s32.totalorder %v2710_v21, %v2629_v10 }
  0x67   : > { %vm1995_vm15 = vmpackc.low %vm291_vm12, %vm289_vm11 }
  0x68   : > { %1988 = vmatpush1.bf16.msk.msra.mxu1 %vm1987_vm3, %v2433_v13  ;;  %vm1997_vm0 = vmpackc.low %vm296_vm14, %vm294_vm13  ;;  %vm298_vm3 = vcmp.eq.s32.totalorder %v2707_v20, %v2625_v9  ;;  %vm301_vm13 = vcmp.eq.s32.totalorder %v2723_v22, %v2629_v10  ;;  %vm303_vm14 = vcmp.eq.s32.totalorder %v2726_v23, %v2629_v10 }
  0x69   : > { %1990 = vmatprep.subr.msk.bf16.mxu1 %vm1989_vm4, %v2433_v13  ;;  %vm300_vm4 = vcmp.eq.s32.totalorder %v2710_v21, %v2625_v9  ;;  %vm1999_vm5 = vmpackc.low %vm295_vm2, %vm293_vm1 }
  0x6a   : > { %vm2001_vm6 = vmpackc.low %vm300_vm4, %vm298_vm3  ;;  %vm379_vm3 = vcmp.eq.s32.totalorder %v2609_v2, %v2751_v26  ;;  %vm381_vm4 = vcmp.eq.s32.totalorder %v2614_v5, %v2751_v26 }
  0x6b   : > { %vm2003_vm11 = vmpackc.low %vm299_vm8, %vm297_vm7 }
  0x6c   : > { %1992 = vmatpush1.bf16.msk.msra.mxu1 %vm1991_vm9, %v2433_v13  ;;  %vm302_vm9 = vcmp.eq.s32.totalorder %v2723_v22, %v2625_v9  ;;  %vm2007_vm1 = vmpackc.low %vm303_vm14, %vm301_vm13 }
  0x6d   : > { %1994 = vmatprep.subr.msk.bf16.mxu1 %vm1993_vm10, %v2433_v13  ;;  %vm304_vm10 = vcmp.eq.s32.totalorder %v2726_v23, %v2625_v9  ;;  %vm2011_vm7 = vmpackc.low %vm381_vm4, %vm379_vm3 }
  0x6e   : > { %vm2005_vm12 = vmpackc.low %vm304_vm10, %vm302_vm9  ;;  %vm383_vm9 = vcmp.eq.s32.totalorder %v2618_v7, %v2751_v26  ;;  %vm385_vm10 = vcmp.eq.s32.totalorder %v2621_v8, %v2751_v26 }
  0x6f   : > { %vm2015_vm13 = vmpackc.low %vm385_vm10, %vm383_vm9 }
  0x70   : > { %1996 = vmatpush1.bf16.msk.msra.mxu1 %vm1995_vm15, %v2433_v13  ;;  %vm380_vm15 = vcmp.eq.s32.totalorder %v2609_v2, %v2741_v25 }
  0x71   : > { %1998 = vmatprep.subr.msk.bf16.mxu1 %vm1997_vm0, %v2433_v13  ;;  %vm382_vm0 = vcmp.eq.s32.totalorder %v2614_v5, %v2741_v25 }
  0x72   : > { %vm2009_vm2 = vmpackc.low %vm382_vm0, %vm380_vm15  ;;  %vm387_vm15 = vcmp.eq.s32.totalorder %v2632_v11, %v2751_v26  ;;  %vm389_vm0 = vcmp.eq.s32.totalorder %v2635_v12, %v2751_v26 }
  0x73   : > { %vm2019_vm3 = vmpackc.low %vm389_vm0, %vm387_vm15 }
  0x74   : > { %2000 = vmatpush1.bf16.msk.msra.mxu1 %vm1999_vm5, %v2433_v13  ;;  %vm384_vm5 = vcmp.eq.s32.totalorder %v2618_v7, %v2741_v25 }
  0x75   : > { %2002 = vmatprep.subr.msk.bf16.mxu1 %vm2001_vm6, %v2433_v13  ;;  %vm386_vm6 = vcmp.eq.s32.totalorder %v2621_v8, %v2741_v25 }
  0x76   : > { %vm2013_vm8 = vmpackc.low %vm386_vm6, %vm384_vm5  ;;  %vm391_vm5 = vcmp.eq.s32.totalorder %v2659_v14, %v2751_v26  ;;  %vm393_vm6 = vcmp.eq.s32.totalorder %v2662_v15, %v2751_v26 }
  0x77   : > { %vm2023_vm9 = vmpackc.low %vm393_vm6, %vm391_vm5 }
  0x78   : > { %2004 = vmatpush1.bf16.msk.msra.mxu1 %vm2003_vm11, %v2433_v13  ;;  %vm388_vm11 = vcmp.eq.s32.totalorder %v2632_v11, %v2741_v25 }
  0x79   : > { %2006 = vmatprep.subr.msk.bf16.mxu1 %vm2005_vm12, %v2433_v13  ;;  %vm390_vm12 = vcmp.eq.s32.totalorder %v2635_v12, %v2741_v25 }
  0x7a   : > { %vm2017_vm14 = vmpackc.low %vm390_vm12, %vm388_vm11  ;;  %vm395_vm11 = vcmp.eq.s32.totalorder %v2675_v16, %v2751_v26  ;;  %vm397_vm12 = vcmp.eq.s32.totalorder %v2678_v17, %v2751_v26 }
  0x7b   : > { %vm2027_vm15 = vmpackc.low %vm397_vm12, %vm395_vm11 }
  0x7c   : > { %2008 = vmatpush1.bf16.msk.msra.mxu1 %vm2007_vm1, %v2433_v13  ;;  %vm392_vm1 = vcmp.eq.s32.totalorder %v2659_v14, %v2741_v25 }
  0x7d   : > { %2010 = vmatprep.subr.msk.bf16.mxu1 %vm2009_vm2, %v2433_v13  ;;  %vm394_vm2 = vcmp.eq.s32.totalorder %v2662_v15, %v2741_v25 }
  0x7e   : > { %vm2021_vm4 = vmpackc.low %vm394_vm2, %vm392_vm1  ;;  %vm399_vm1 = vcmp.eq.s32.totalorder %v2691_v18, %v2751_v26  ;;  %vm401_vm2 = vcmp.eq.s32.totalorder %v2694_v19, %v2751_v26 }
  0x7f   : > { %540 = vmatmul.mubr.f32.vlgmr.msra.gmra.mrb[0].mxu1 %v2771_v27  ;;  %vm2031_vm5 = vmpackc.low %vm401_vm2, %vm399_vm1 }
  0x80   : > { %2012 = vmatpush1.bf16.msk.msra.mxu1 %vm2011_vm7, %v2433_v13  ;;  %545 = vmatprep.mubr.f32.mxu1 %v2432_v1  ;;  %vm396_vm7 = vcmp.eq.s32.totalorder %v2675_v16, %v2741_v25 }
  0x81   : > { %2014 = vmatprep.subr.msk.bf16.mxu1 %vm2013_vm8, %v2433_v13  ;;  %vm398_vm8 = vcmp.eq.s32.totalorder %v2678_v17, %v2741_v25 }
  0x82   : > { %vm2025_vm10 = vmpackc.low %vm398_vm8, %vm396_vm7  ;;  %vm403_vm7 = vcmp.eq.s32.totalorder %v2707_v20, %v2751_v26  ;;  %vm405_vm8 = vcmp.eq.s32.totalorder %v2710_v21, %v2751_v26 }
  0x83   : > { %546 = vmatmul.mubr.f32.gmra.mrb[2].mxu1 %v2788_v28  ;;  %vm2035_vm11 = vmpackc.low %vm405_vm8, %vm403_vm7 }
  0x84   : > { %551 = vmatprep.mubr.f32.mxu1 %v2432_v1  ;;  %2016 = vmatpush1.bf16.msk.msra.mxu1 %vm2015_vm13, %v2433_v13  ;;  %vm400_vm13 = vcmp.eq.s32.totalorder %v2691_v18, %v2741_v25 }
  0x85   : > { %2018 = vmatprep.subr.msk.bf16.mxu1 %vm2017_vm14, %v2433_v13  ;;  %vm402_vm14 = vcmp.eq.s32.totalorder %v2694_v19, %v2741_v25 }
  0x86   : > { %vm2029_vm0 = vmpackc.low %vm402_vm14, %vm400_vm13  ;;  %vm407_vm13 = vcmp.eq.s32.totalorder %v2723_v22, %v2751_v26  ;;  %vm409_vm14 = vcmp.eq.s32.totalorder %v2726_v23, %v2751_v26 }
  0x87   : > { %552 = vmatmul.mubr.f32.gmra.mrb[4].mxu1 %v2804_v29 }
  0x88   : > { %557 = vmatprep.mubr.f32.mxu1 %v2432_v1  ;;  %2020 = vmatpush1.bf16.msk.msra.mxu1 %vm2019_vm3, %v2433_v13  ;;  %vm404_vm3 = vcmp.eq.s32.totalorder %v2707_v20, %v2741_v25 }
  0x89   : > { %2022 = vmatprep.subr.msk.bf16.mxu1 %vm2021_vm4, %v2433_v13  ;;  %vm406_vm4 = vcmp.eq.s32.totalorder %v2710_v21, %v2741_v25 }
  0x8a   : > { %vm2033_vm6 = vmpackc.low %vm406_vm4, %vm404_vm3 }
  0x8b   : > { %558 = vmatmul.mubr.f32.gmra.mrb[6].mxu1 %v2821_v30 }
  0x8c   : > { %563 = vmatprep.mubr.f32.mxu1 %v2432_v1  ;;  %2024 = vmatpush1.bf16.msk.msra.mxu1 %vm2023_vm9, %v2433_v13  ;;  %vm408_vm9 = vcmp.eq.s32.totalorder %v2723_v22, %v2741_v25 }
  0x8d   : > { %2026 = vmatprep.subr.msk.bf16.mxu1 %vm2025_vm10, %v2433_v13  ;;  %vm410_vm10 = vcmp.eq.s32.totalorder %v2726_v23, %v2741_v25 }
  0x8e   : > { %vm2037_vm12 = vmpackc.low %vm410_vm10, %vm408_vm9 }
  0x8f   : > { %564 = vmatmul.mubr.f32.gmra.mrb[8].mxu1 %v2838_v31 }
  0x90   : > { %569 = vmatprep.mubr.f32.mxu1 %v2432_v1  ;;  %2028 = vmatpush1.bf16.msk.msra.mxu1 %vm2027_vm15, %v2433_v13  ;;  %vm2039_vm15 = vmpackc.low %vm409_vm14, %vm407_vm13 }
  0x91   : > { %2030 = vmatprep.subr.msk.bf16.mxu1 %vm2029_vm0, %v2433_v13 }
  0x93   : > { %570 = vmatmul.mubr.f32.gmra.mrb[10].mxu1 %v236_v32 }
  0x94   : > { %575 = vmatprep.mubr.f32.mxu1 %v2432_v1  ;;  %2032 = vmatpush1.bf16.msk.msra.mxu1 %vm2031_vm5, %v2433_v13 }
  0x95   : > { %2034 = vmatprep.subr.msk.bf16.mxu1 %vm2033_vm6, %v2433_v13 }
  0x97   : > { %576 = vmatmul.mubr.f32.gmra.mrb[12].mxu1 %v237_v33 }
  0x98   : > { %581 = vmatprep.mubr.f32.mxu1 %v2432_v1  ;;  %2036 = vmatpush1.bf16.msk.msra.mxu1 %vm2035_vm11, %v2433_v13 }
  0x99   : > { %2038 = vmatprep.subr.msk.bf16.mxu1 %vm2037_vm12, %v2433_v13 }
  0x9b   : > { %582 = vmatmul.mubr.f32.gmra.mrb[14].mxu1 %v238_v34 }
  0x9c   : > { %587 = vmatprep.mubr.f32.mxu1 %v2432_v1  ;;  %2040 = vmatpush1.bf16.msk.msra.mxu1 %vm2039_vm15, %v2433_v13 }
  0x9f   : > { %588 = vmatmul.mubr.f32.gmra.mrb[16].mxu1 %v239_v35 }
  0xa0   : > { %593 = vmatprep.mubr.f32.mxu1 %v2432_v1 }
  0xa3   : > { %594 = vmatmul.mubr.f32.gmra.mrb[18].mxu1 %v240_v36 }
  0xa4   : > { %599 = vmatprep.mubr.f32.mxu1 %v2432_v1 }
  0xa7   : > { %600 = vmatmul.mubr.f32.gmra.mrb[20].mxu1 %v241_v37 }
  0xa8   : > { %605 = vmatprep.mubr.f32.mxu1 %v2432_v1 }
  0xab   : > { %606 = vmatmul.mubr.f32.gmra.mrb[22].mxu1 %v242_v38 }
  0xac   : > { %611 = vmatprep.mubr.f32.mxu1 %v2432_v1 }
  0xaf   : > { %612 = vmatmul.mubr.f32.gmra.mrb[24].mxu1 %v243_v39 }
  0xb0   : > { %617 = vmatprep.mubr.f32.mxu1 %v2432_v1 }
  0xb3   : > { %618 = vmatmul.mubr.f32.gmra.mrb[26].mxu1 %v244_v40 }
  0xb4   : > { %623 = vmatprep.mubr.f32.mxu1 %v2432_v1 }
  0xb7   : > { %624 = vmatmul.mubr.f32.gmra.mrb[28].mxu1 %v245_v41 }
  0xb8   : > { %629 = vmatprep.mubr.f32.mxu1 %v2432_v1 }
  0xbb   : > { %630 = vmatmul.mubr.f32.gmra.mrb[30].mxu1 %v246_v42 }
  0xbc   : > { %700 = vmatprep.mubr.f32.mxu1 %v2432_v1 }
  0xbf   : > { %701 = vmatmul.mubr.f32.vlgmr.msra.gmra.mrb[32].mxu1 %v2771_v27 }
  0xc0   : > { %706 = vmatprep.mubr.f32.mxu1 %v2432_v1 }
  0xc3   : > { %707 = vmatmul.mubr.f32.gmra.mrb[34].mxu1 %v2788_v28 }
  0xc4   : > { %712 = vmatprep.mubr.f32.mxu1 %v2432_v1 }
  0xc7   : > { %713 = vmatmul.mubr.f32.gmra.mrb[36].mxu1 %v2804_v29 }
  0xc8   : > { %718 = vmatprep.mubr.f32.mxu1 %v2432_v1 }
  0xcb   : > { %719 = vmatmul.mubr.f32.gmra.mrb[38].mxu1 %v2821_v30 }
  0xcc   : > { %724 = vmatprep.mubr.f32.mxu1 %v2432_v1 }
  0xcf   : > { %725 = vmatmul.mubr.f32.gmra.mrb[40].mxu1 %v2838_v31 }
  0xd0   : > { %730 = vmatprep.mubr.f32.mxu1 %v2432_v1 }
  0xd3   : > { %731 = vmatmul.mubr.f32.gmra.mrb[42].mxu1 %v236_v32 }
  0xd4   : > { %736 = vmatprep.mubr.f32.mxu1 %v2432_v1 }
  0xd7   : > { %737 = vmatmul.mubr.f32.gmra.mrb[44].mxu1 %v237_v33  ;;  %v845_v33 = vld [vmem:[#allocation5 + $0x8] sm:$0xff] }
  0xd8   : > { %742 = vmatprep.mubr.f32.mxu1 %v2432_v1 }
  0xdb   : > { %743 = vmatmul.mubr.f32.gmra.mrb[46].mxu1 %v238_v34 }
  0xdc   : > { %748 = vmatprep.mubr.f32.mxu1 %v2432_v1 }
  0xdf   : > { %749 = vmatmul.mubr.f32.gmra.mrb[48].mxu1 %v239_v35 }
  0xe0   : > { %754 = vmatprep.mubr.f32.mxu1 %v2432_v1 }
  0xe3   : > { %755 = vmatmul.mubr.f32.gmra.mrb[50].mxu1 %v240_v36 }
  0xe4   : > { %760 = vmatprep.mubr.f32.mxu1 %v2432_v1 }
  0xe7   : > { %761 = vmatmul.mubr.f32.gmra.mrb[52].mxu1 %v241_v37 }
  0xe8   : > { %766 = vmatprep.mubr.f32.mxu1 %v2432_v1 }
  0xeb   : > { %767 = vmatmul.mubr.f32.gmra.mrb[54].mxu1 %v242_v38 }
  0xec   : > { %772 = vmatprep.mubr.f32.mxu1 %v2432_v1 }
  0xef   : > { %773 = vmatmul.mubr.f32.gmra.mrb[56].mxu1 %v243_v39  ;;  %v846_v39 = vld [vmem:[#allocation5 + $0x20] sm:$0xff] }
  0xf0   : > { %778 = vmatprep.mubr.f32.mxu1 %v2432_v1 }
  0xf3   : > { %779 = vmatmul.mubr.f32.gmra.mrb[58].mxu1 %v244_v40 }
  0xf4   : > { %784 = vmatprep.mubr.f32.mxu1 %v2432_v1 }
  0xf7   : > { %785 = vmatmul.mubr.f32.gmra.mrb[60].mxu1 %v245_v41 }
  0xf8   : > { %790 = vmatprep.mubr.f32.mxu1 %v2432_v1 }
  0xfb   : > { %791 = vmatmul.mubr.f32.gmra.mrb[62].mxu1 %v246_v42 }
  0xfc   : > { %973 = vmatprep.mubr.f32.mxu1 %v2432_v1 }
 0x152   : > { %v2936_v43 = vpop.f32.mrb[0].mxu1 }
 0x153   : > { %v2938_v44 = vpop.f32.mrb[1].mxu1 }
 0x156   : > { %v2940_v45 = vpop.f32.mrb[2].mxu1 }
 0x157   : > { %v2942_v46 = vpop.f32.mrb[3].mxu1  ;;  %v2043_v47 = vpack.c.bf16 %v2940_v45, %v2936_v43 }
 0x158   : > { %v2041_v48 = vpack.c.bf16 %v2942_v46, %v2938_v44 }
 0x15a   : > { %v2948_v49 = vpop.f32.mrb[4].mxu1  ;;  %2042 = vmatprep.subr.bf16.mxu0 %v2041_v48  ;;  %2137 = vmatprep.subr.bf16.mxu1 %v2041_v48  ;;  %v847_v48 = vld [vmem:[#allocation5 + $0x38] sm:$0xff] }
 0x15b   : > { %v2950_v50 = vpop.f32.mrb[5].mxu1  ;;  %2044 = vmatpush1.bf16.msra.mxu0 %v2043_v47  ;;  %2145 = vmatpush1.bf16.msra.mxu1 %v2043_v47 }
 0x15e   : > { %v2952_v51 = vpop.f32.mrb[6].mxu1 }
 0x15f   : > { %v2047_v52 = vpack.c.bf16 %v2952_v51, %v2948_v49  ;;  %v2956_v53 = vpop.f32.mrb[7].mxu1 }
 0x160   : > { %v2045_v54 = vpack.c.bf16 %v2956_v53, %v2950_v50 }
 0x162   : > { %v2960_v55 = vpop.f32.mrb[8].mxu1  ;;  %2046 = vmatprep.subr.bf16.mxu0 %v2045_v54  ;;  %2138 = vmatprep.subr.bf16.mxu1 %v2045_v54 }
 0x163   : > { %v2962_v56 = vpop.f32.mrb[9].mxu1  ;;  %2048 = vmatpush1.bf16.msra.mxu0 %v2047_v52  ;;  %2146 = vmatpush1.bf16.msra.mxu1 %v2047_v52 }
 0x166   : > { %v2964_v57 = vpop.f32.mrb[10].mxu1 }
 0x167   : > { %v2051_v58 = vpack.c.bf16 %v2964_v57, %v2960_v55  ;;  %v2968_v59 = vpop.f32.mrb[11].mxu1 }
 0x168   : > { %v2049_v60 = vpack.c.bf16 %v2968_v59, %v2962_v56 }
 0x16a   : > { %v2972_v61 = vpop.f32.mrb[12].mxu1  ;;  %2050 = vmatprep.subr.bf16.mxu0 %v2049_v60  ;;  %2139 = vmatprep.subr.bf16.mxu1 %v2049_v60  ;;  %v848_v60 = vld [vmem:[#allocation5 + $0x50] sm:$0xff] }
 0x16b   : > { %v2974_v62 = vpop.f32.mrb[13].mxu1  ;;  %2052 = vmatpush1.bf16.msra.mxu0 %v2051_v58  ;;  %2147 = vmatpush1.bf16.msra.mxu1 %v2051_v58 }
 0x16e   : > { %v2976_v63 = vpop.f32.mrb[14].mxu1 }
 0x16f   : > { %v2055_v3 = vpack.c.bf16 %v2976_v63, %v2972_v61  ;;  %v2980_v4 = vpop.f32.mrb[15].mxu1 }
 0x170   : > { %v2053_v5 = vpack.c.bf16 %v2980_v4, %v2974_v62 }
 0x172   : > { %v2984_v6 = vpop.f32.mrb[16].mxu1  ;;  %2054 = vmatprep.subr.bf16.mxu0 %v2053_v5  ;;  %2140 = vmatprep.subr.bf16.mxu1 %v2053_v5 }
 0x173   : > { %v2986_v7 = vpop.f32.mrb[17].mxu1  ;;  %2056 = vmatpush1.bf16.msra.mxu0 %v2055_v3  ;;  %2148 = vmatpush1.bf16.msra.mxu1 %v2055_v3 }
 0x176   : > { %v2988_v8 = vpop.f32.mrb[18].mxu1 }
 0x177   : > { %v2059_v9 = vpack.c.bf16 %v2988_v8, %v2984_v6  ;;  %v2992_v10 = vpop.f32.mrb[19].mxu1 }
 0x178   : > { %v2057_v11 = vpack.c.bf16 %v2992_v10, %v2986_v7 }
 0x17a   : > { %v2996_v12 = vpop.f32.mrb[20].mxu1  ;;  %2058 = vmatprep.subr.bf16.mxu0 %v2057_v11  ;;  %2141 = vmatprep.subr.bf16.mxu1 %v2057_v11 }
 0x17b   : > { %v2998_v13 = vpop.f32.mrb[21].mxu1  ;;  %2060 = vmatpush1.bf16.msra.mxu0 %v2059_v9  ;;  %2149 = vmatpush1.bf16.msra.mxu1 %v2059_v9 }
 0x17e   : > { %v3000_v14 = vpop.f32.mrb[22].mxu1 }
 0x17f   : > { %v2063_v15 = vpack.c.bf16 %v3000_v14, %v2996_v12  ;;  %v3004_v16 = vpop.f32.mrb[23].mxu1 }
 0x180   : > { %v2061_v17 = vpack.c.bf16 %v3004_v16, %v2998_v13 }
 0x182   : > { %v3008_v18 = vpop.f32.mrb[24].mxu1  ;;  %2062 = vmatprep.subr.bf16.mxu0 %v2061_v17  ;;  %2142 = vmatprep.subr.bf16.mxu1 %v2061_v17  ;;  %v849_v17 = vld [vmem:[#allocation5 + $0x68] sm:$0xff] }
 0x183   : > { %v3010_v19 = vpop.f32.mrb[25].mxu1  ;;  %2064 = vmatpush1.bf16.msra.mxu0 %v2063_v15  ;;  %2150 = vmatpush1.bf16.msra.mxu1 %v2063_v15 }
 0x186   : > { %v3012_v20 = vpop.f32.mrb[26].mxu1 }
 0x187   : > { %v2067_v21 = vpack.c.bf16 %v3012_v20, %v3008_v18  ;;  %v3016_v22 = vpop.f32.mrb[27].mxu1 }
 0x188   : > { %v2065_v23 = vpack.c.bf16 %v3016_v22, %v3010_v19 }
 0x18a   : > { %v3020_v24 = vpop.f32.mrb[28].mxu1  ;;  %2066 = vmatprep.subr.bf16.mxu0 %v2065_v23  ;;  %2143 = vmatprep.subr.bf16.mxu1 %v2065_v23 }
 0x18b   : > { %v3022_v25 = vpop.f32.mrb[29].mxu1  ;;  %2068 = vmatpush1.bf16.msra.mxu0 %v2067_v21  ;;  %2151 = vmatpush1.bf16.msra.mxu1 %v2067_v21 }
 0x18e   : > { %v3024_v26 = vpop.f32.mrb[30].mxu1 }
 0x18f   : > { %v2071_v27 = vpack.c.bf16 %v3024_v26, %v3020_v24  ;;  %v3028_v28 = vpop.f32.mrb[31].mxu1 }
 0x190   : > { %v2069_v29 = vpack.c.bf16 %v3028_v28, %v3022_v25 }
 0x192   : > { %v3032_v30 = vpop.f32.mrb[32].mxu1  ;;  %2070 = vmatprep.subr.bf16.mxu0 %v2069_v29  ;;  %2144 = vmatprep.subr.bf16.mxu1 %v2069_v29  ;;  %v850_v29 = vld [vmem:[#allocation5 + $0x80] sm:$0xff] }
 0x193   : > { %v797_v31 = vmul.f32 %v3032_v30, %v2936_v43  ;;  %v3036_v32 = vpop.f32.mrb[33].mxu1  ;;  %2072 = vmatpush1.bf16.msra.mxu0 %v2071_v27  ;;  %2152 = vmatpush1.bf16.msra.mxu1 %v2071_v27 }
 0x194   : > { %v798_v34 = vmul.f32 %v3036_v32, %v2938_v44 }
 0x196   : > { %v3040_v35 = vpop.f32.mrb[34].mxu1  ;;  %926 = vmatmul.mubr.f32.vlgmr.msra.gmra.mrb[0].mxu0 %v845_v33 }
 0x197   : > { %v799_v36 = vmul.f32 %v3040_v35, %v2940_v45  ;;  %v2107_v37 = vpack.c.bf16 %v3040_v35, %v3032_v30  ;;  %v3046_v38 = vpop.f32.mrb[35].mxu1  ;;  %931 = vmatprep.mubr.f32.mxu0 %v2432_v1  ;;  %v831_v30 = vld [vmem:[#allocation5 + $0x30] sm:$0xff]  ;;  %v832_v35 = vld [vmem:[#allocation5 + $0x48] sm:$0xff] }
 0x198   : > { %v800_v40 = vmul.f32 %v3046_v38, %v2942_v46  ;;  %v2105_v41 = vpack.c.bf16 %v3046_v38, %v3036_v32  ;;  %v1400_v32 = vld [vmem:[%s3453_s3 + $0x40] sm:$0xff]  ;;  %v833_v38 = vld [vmem:[#allocation5 + $0x60] sm:$0xff] }
 0x199   : > { %v2075_v42 = vpack.c.bf16 %v799_v36, %v797_v31 }
 0x19a   : > { %v2073_v43 = vpack.c.bf16 %v800_v40, %v798_v34  ;;  %v3053_v44 = vpop.f32.mrb[36].mxu1  ;;  %932 = vmatmul.mubr.f32.gmra.mrb[2].mxu0 %v846_v39  ;;  %v851_v40 = vld [vmem:[#allocation5 + $0x98] sm:$0xff] }
 0x19b   : > { %v801_v45 = vmul.f32 %v3053_v44, %v2948_v49  ;;  %v3057_v47 = vpop.f32.mrb[37].mxu1  ;;  %937 = vmatprep.mubr.f32.mxu0 %v2432_v1 }
 0x19c   : > { %v802_v52 = vmul.f32 %v3057_v47, %v2950_v50  ;;  %2074 = vmatprep.subr.bf16.mxu0 %v2073_v43 }
 0x19d   : > { %2076 = vmatpush1.bf16.msra.mxu0 %v2075_v42 }
 0x19e   : > { %v3062_v46 = vpop.f32.mrb[38].mxu1  ;;  %938 = vmatmul.mubr.f32.gmra.mrb[4].mxu0 %v847_v48  ;;  %v852_v48 = vld [vmem:[#allocation5 + $0xb0] sm:$0xff] }
 0x19f   : > { %v803_v54 = vmul.f32 %v3062_v46, %v2952_v51  ;;  %v2111_v58 = vpack.c.bf16 %v3062_v46, %v3053_v44  ;;  %v3068_v49 = vpop.f32.mrb[39].mxu1  ;;  %943 = vmatprep.mubr.f32.mxu0 %v2432_v1  ;;  %v834_v44 = vld [vmem:[#allocation5 + $0x78] sm:$0xff]  ;;  %v835_v46 = vld [vmem:[#allocation5 + $0x90] sm:$0xff] }
 0x1a0   : > { %v804_v3 = vmul.f32 %v3068_v49, %v2956_v53  ;;  %v2109_v50 = vpack.c.bf16 %v3068_v49, %v3057_v47  ;;  %v1403_v47 = vld [vmem:[%s3453_s3 + $0x58] sm:$0xff]  ;;  %v836_v49 = vld [vmem:[#allocation5 + $0xa8] sm:$0xff] }
 0x1a1   : > { %v2079_v5 = vpack.c.bf16 %v803_v54, %v801_v45 }
 0x1a2   : > { %v2077_v9 = vpack.c.bf16 %v804_v3, %v802_v52  ;;  %v3075_v11 = vpop.f32.mrb[40].mxu1  ;;  %944 = vmatmul.mubr.f32.gmra.mrb[6].mxu0 %v848_v60 }
 0x1a3   : > { %v805_v51 = vmul.f32 %v3075_v11, %v2960_v55  ;;  %v3079_v15 = vpop.f32.mrb[41].mxu1  ;;  %949 = vmatprep.mubr.f32.mxu0 %v2432_v1 }
 0x1a4   : > { %v806_v21 = vmul.f32 %v3079_v15, %v2962_v56  ;;  %2078 = vmatprep.subr.bf16.mxu0 %v2077_v9 }
 0x1a5   : > { %2080 = vmatpush1.bf16.msra.mxu0 %v2079_v5 }
 0x1a6   : > { %v3084_v53 = vpop.f32.mrb[42].mxu1  ;;  %950 = vmatmul.mubr.f32.gmra.mrb[8].mxu0 %v849_v17 }
 0x1a7   : > { %v807_v23 = vmul.f32 %v3084_v53, %v2964_v57  ;;  %v2115_v27 = vpack.c.bf16 %v3084_v53, %v3075_v11  ;;  %v3090_v55 = vpop.f32.mrb[43].mxu1  ;;  %955 = vmatprep.mubr.f32.mxu0 %v2432_v1  ;;  %v837_v11 = vld [vmem:[#allocation5 + $0xc0] sm:$0xff]  ;;  %v838_v53 = vld [vmem:[#allocation5 + $0xd8] sm:$0xff] }
 0x1a8   : > { %v808_v31 = vmul.f32 %v3090_v55, %v2968_v59  ;;  %v2113_v56 = vpack.c.bf16 %v3090_v55, %v3079_v15  ;;  %v1406_v15 = vld [vmem:[%s3453_s3 + $0x70] sm:$0xff]  ;;  %v2436_v55 = vmov 2  }
 0x1a9   : > { %v2083_v33 = vpack.c.bf16 %v807_v23, %v805_v51 }
 0x1aa   : > { %v2081_v34 = vpack.c.bf16 %v808_v31, %v806_v21  ;;  %v3097_v36 = vpop.f32.mrb[44].mxu1  ;;  %956 = vmatmul.mubr.f32.gmra.mrb[10].mxu0 %v850_v29  ;;  %v854_v31 = vld [vmem:[#allocation5 + $0xe0] sm:$0xff] }
 0x1ab   : > { %v809_v57 = vmul.f32 %v3097_v36, %v2972_v61  ;;  %v3101_v39 = vpop.f32.mrb[45].mxu1  ;;  %961 = vmatprep.mubr.f32.mxu0 %v2432_v1 }
 0x1ac   : > { %v810_v42 = vmul.f32 %v3101_v39, %v2974_v62  ;;  %2082 = vmatprep.subr.bf16.mxu0 %v2081_v34 }
 0x1ad   : > { %2084 = vmatpush1.bf16.msra.mxu0 %v2083_v33 }
 0x1ae   : > { %v3106_v59 = vpop.f32.mrb[46].mxu1  ;;  %962 = vmatmul.mubr.f32.gmra.mrb[12].mxu0 %v851_v40 }
 0x1af   : > { %v811_v43 = vmul.f32 %v3106_v59, %v2976_v63  ;;  %v2119_v45 = vpack.c.bf16 %v3106_v59, %v3097_v36  ;;  %v3112_v61 = vpop.f32.mrb[47].mxu1  ;;  %967 = vmatprep.mubr.f32.mxu0 %v2432_v1  ;;  %v1690_v36 = vld [vmem:[%s3453_s3] sm:$0x1] }
 0x1b0   : > { %v812_v52 = vmul.f32 %v3112_v61, %v2980_v4  ;;  %v2117_v62 = vpack.c.bf16 %v3112_v61, %v3101_v39  ;;  %v853_v4 = vld [vmem:[#allocation5 + $0xc8] sm:$0xff]  ;;  %v841_v39 = vld [vmem:[#allocation5 + $0x120] sm:$0xff]  ;;  %v842_v59 = vld [vmem:[#allocation5 + $0x138] sm:$0xff] }
 0x1b1   : > { %v2087_v54 = vpack.c.bf16 %v811_v43, %v809_v57  ;;  %974 = vmatmul.mubr.f32.vlgmr.msra.gmra.mrb[64].mxu1 %v853_v4  ;;  %v855_v43 = vld [vmem:[#allocation5 + $0xf8] sm:$0xff]  ;;  %v856_v4 = vld [vmem:[#allocation5 + $0x110] sm:$0xff]  ;;  %v844_v61 = vld [vmem:[#allocation5 + $0x168] sm:$0xff] }
 0x1b2   : > { %v2085_v60 = vpack.c.bf16 %v812_v52, %v810_v42  ;;  %v3119_v3 = vpop.f32.mrb[48].mxu1  ;;  %968 = vmatmul.mubr.f32.gmra.mrb[14].mxu0 %v852_v48  ;;  %979 = vmatprep.mubr.f32.mxu1 %v2432_v1  ;;  %v2434_v42 = vmov 0  }
 0x1b3   : > { %v813_v63 = vmul.f32 %v3119_v3, %v2984_v6  ;;  %v3123_v5 = vpop.f32.mrb[49].mxu1  ;;  %1086 = vmatprep.mubr.f32.mxu0 %v2432_v1  ;;  %2282 = vset.pattern.permute.xlu0 %v2434_v42 }
 0x1b4   : > { %v814_v9 = vmul.f32 %v3123_v5, %v2986_v7  ;;  %2086 = vmatprep.subr.bf16.mxu0 %v2085_v60  ;;  %2283 = vset.pattern.permute.xlu1 %v2434_v42 }
 0x1b5   : > { %2088 = vmatpush1.bf16.msra.mxu0 %v2087_v54  ;;  %980 = vmatmul.mubr.f32.gmra.mrb[66].mxu1 %v854_v31 }
 0x1b6   : > { %v3128_v51 = vpop.f32.mrb[50].mxu1  ;;  %985 = vmatprep.mubr.f32.mxu1 %v2432_v1 }
 0x1b7   : > { %v815_v17 = vmul.f32 %v3128_v51, %v2988_v8  ;;  %v2123_v21 = vpack.c.bf16 %v3128_v51, %v3119_v3  ;;  %v3134_v6 = vpop.f32.mrb[51].mxu1  ;;  %v1184_v3 = vld [vmem:[#allocation5 + $0x28] sm:$0xff]  ;;  %v1186_v51 = vld [vmem:[#allocation5 + $0x58] sm:$0xff] }
 0x1b8   : > { %v816_v23 = vmul.f32 %v3134_v6, %v2992_v10  ;;  %v2121_v7 = vpack.c.bf16 %v3134_v6, %v3123_v5  ;;  %v1392_v10 = vld [vmem:[%s3453_s3] sm:$0xff]  ;;  %v1185_v5 = vld [vmem:[#allocation5 + $0x40] sm:$0xff]  ;;  %v1188_v6 = vld [vmem:[#allocation5 + $0x88] sm:$0xff] }
 0x1b9   : > { %v2091_v29 = vpack.c.bf16 %v815_v17, %v813_v63  ;;  %1410 = vperm.xlu0 %2282, %v1392_v10   ;;  %986 = vmatmul.mubr.f32.gmra.mrb[68].mxu1 %v855_v43  ;;  %v1394_v63 = vld [vmem:[%s3453_s3 + $0x10] sm:$0xff]  ;;  %v2435_v43 = vmov 1  }
 0x1ba   : > { %v2089_v33 = vpack.c.bf16 %v816_v23, %v814_v9  ;;  %v3141_v34 = vpop.f32.mrb[52].mxu1  ;;  %991 = vmatprep.mubr.f32.mxu1 %v2432_v1  ;;  %1420 = vperm.xlu1 %2283, %v1394_v63  }
 0x1bb   : > { %v817_v8 = vmul.f32 %v3141_v34, %v2996_v12  ;;  %v3145_v57 = vpop.f32.mrb[53].mxu1 }
 0x1bc   : > { %v818_v40 = vmul.f32 %v3145_v57, %v2998_v13  ;;  %2090 = vmatprep.subr.bf16.mxu0 %v2089_v33  ;;  %v1395_v33 = vld [vmem:[%s3453_s3 + $0x18] sm:$0xff] }
 0x1bd   : > { %2092 = vmatpush1.bf16.msra.mxu0 %v2091_v29  ;;  %992 = vmatmul.mubr.f32.gmra.mrb[70].mxu1 %v856_v4 }
 0x1be   : > { %v3153_v48 = vpop.f32.mrb[54].mxu1  ;;  %997 = vmatprep.mubr.f32.mxu1 %v2432_v1  ;;  %1425 = vperm.xlu1 %2283, %v1395_v33  }
 0x1bf   : > { %v819_v12 = vmul.f32 %v3153_v48, %v3000_v14  ;;  %v2127_v52 = vpack.c.bf16 %v3153_v48, %v3141_v34  ;;  %v3159_v13 = vpop.f32.mrb[55].mxu1  ;;  %v1393_v14 = vld [vmem:[%s3453_s3 + $0x8] sm:$0xff]  ;;  %v1190_v34 = vld [vmem:[#allocation5 + $0xb8] sm:$0xff]  ;;  %v1192_v48 = vld [vmem:[#allocation5 + $0xe8] sm:$0xff] }
 0x1c0   : > { %v820_v54 = vmul.f32 %v3159_v13, %v3004_v16  ;;  %v2125_v60 = vpack.c.bf16 %v3159_v13, %v3145_v57  ;;  %1415 = vperm.xlu0 %2282, %v1393_v14   ;;  %v1191_v57 = vld [vmem:[#allocation5 + $0xd0] sm:$0xff]  ;;  %v1194_v13 = vld [vmem:[#allocation5 + $0x118] sm:$0xff] }
 0x1c1   : > { %v2095_v9 = vpack.c.bf16 %v819_v12, %v817_v8  ;;  %v857_v8 = vld [vmem:[#allocation5 + $0x128] sm:$0xff] }
 0x1c2   : > { %v2093_v17 = vpack.c.bf16 %v820_v54, %v818_v40  ;;  %v3172_v23 = vpop.f32.mrb[56].mxu1  ;;  %998 = vmatmul.mubr.f32.gmra.mrb[72].mxu1 %v857_v8  ;;  %2285 = vset.pattern.permute.xlu1 %v2435_v43 }
 0x1c3   : > { %v821_v16 = vmul.f32 %v3172_v23, %v3008_v18  ;;  %v3176_v29 = vpop.f32.mrb[57].mxu1  ;;  %1003 = vmatprep.mubr.f32.mxu1 %v2432_v1  ;;  %1557 = vperm.xlu1 %2285, %v1393_v14  }
 0x1c4   : > { %v822_v31 = vmul.f32 %v3176_v29, %v3010_v19  ;;  %2094 = vmatprep.subr.bf16.mxu0 %v2093_v17  ;;  %2284 = vset.pattern.permute.xlu0 %v2435_v43  ;;  %v858_v17 = vld [vmem:[#allocation5 + $0x140] sm:$0xff] }
 0x1c5   : > { %2096 = vmatpush1.bf16.msra.mxu0 %v2095_v9  ;;  %1553 = vperm.xlu0 %2284, %v1392_v10  }
 0x1c6   : > { %v3184_v40 = vpop.f32.mrb[58].mxu1  ;;  %1004 = vmatmul.mubr.f32.gmra.mrb[74].mxu1 %v858_v17  ;;  %v829_v17 = vld [vmem:[#allocation5] sm:$0xff] }
 0x1c7   : > { %v823_v18 = vmul.f32 %v3184_v40, %v3012_v20  ;;  %v2131_v19 = vpack.c.bf16 %v3184_v40, %v3172_v23  ;;  %v3191_v12 = vpop.f32.mrb[59].mxu1  ;;  %1009 = vmatprep.mubr.f32.mxu1 %v2432_v1  ;;  %2286 = vset.pattern.permute.xlu1 %v2434_v42  ;;  %v1196_v23 = vld [vmem:[#allocation5 + $0x148] sm:$0xff]  ;;  %v1198_v40 = vld [vmem:[#allocation5 + $0x178] sm:$0xff] }
 0x1c8   : > { %v824_v54 = vmul.f32 %v3191_v12, %v3016_v22  ;;  %v2129_v9 = vpack.c.bf16 %v3191_v12, %v3176_v29  ;;  %v1197_v29 = vld [vmem:[#allocation5 + $0x160] sm:$0xff] }
 0x1c9   : > { %v2099_v4 = vpack.c.bf16 %v823_v18, %v821_v16  ;;  %1561 = vperm.xlu0 %2284, %v1394_v63   ;;  %v859_v16 = vld [vmem:[#allocation5 + $0x158] sm:$0xff] }
 0x1ca   : > { %v2097_v8 = vpack.c.bf16 %v824_v54, %v822_v31  ;;  %v3199_v20 = vpop.f32.mrb[60].mxu1  ;;  %1010 = vmatmul.mubr.f32.gmra.mrb[76].mxu1 %v859_v16  ;;  %v860_v54 = vld [vmem:[#allocation5 + $0x170] sm:$0xff] }
 0x1cb   : > { %v825_v10 = vmul.f32 %v3199_v20, %v3020_v24  ;;  %v3203_v0 = vpop.f32.mrb[61].mxu1  ;;  %1015 = vmatprep.mubr.f32.mxu1 %v2432_v1 }
 0x1cc   : > { %v826_v22 = vmul.f32 %v3203_v0, %v3022_v25  ;;  %2098 = vmatprep.subr.bf16.mxu0 %v2097_v8  ;;  %v1396_v25 = vld [vmem:[%s3453_s3 + $0x20] sm:$0xff] }
 0x1cd   : > { %2100 = vmatpush1.bf16.msra.mxu0 %v2099_v4  ;;  %1565 = vperm.xlu0 %2284, %v1395_v33   ;;  %v1397_v33 = vld [vmem:[%s3453_s3 + $0x28] sm:$0xff]  ;;  %v830_v8 = vld [vmem:[#allocation5 + $0x18] sm:$0xff] }
 0x1ce   : > { %v3208_v18 = vpop.f32.mrb[62].mxu1  ;;  %1430 = vperm.xlu1 %2286, %v1396_v25   ;;  %1016 = vmatmul.mubr.f32.gmra.mrb[78].mxu1 %v860_v54 }
 0x1cf   : > { %v827_v14 = vmul.f32 %v3208_v18, %v3024_v26  ;;  %v2135_v24 = vpack.c.bf16 %v3208_v18, %v3199_v20  ;;  %v3214_v31 = vpop.f32.mrb[63].mxu1 }
 0x1d0   : > { %v828_v63 = vmul.f32 %v3214_v31, %v3028_v28  ;;  %v2133_v42 = vpack.c.bf16 %v3214_v31, %v3203_v0  ;;  %v1398_v28 = vld [vmem:[%s3453_s3 + $0x30] sm:$0xff]  ;;  %v1407_v0 = vld [vmem:[%s3453_s3 + $0x78] sm:$0xff] }
 0x1d1   : > { %v2103_v26 = vpack.c.bf16 %v827_v14, %v825_v10  ;;  %1569 = vperm.xlu0 %2284, %v1396_v25   ;;  %v1399_v10 = vld [vmem:[%s3453_s3 + $0x38] sm:$0xff] }
 0x1d2   : > { %v2101_v4 = vpack.c.bf16 %v828_v63, %v826_v22  ;;  %1435 = vperm.xlu1 %2286, %v1397_v33  }
 0x1d4   : > { %2102 = vmatprep.subr.bf16.mxu0 %v2101_v4 }
 0x1d5   : > { %2104 = vmatpush1.bf16.msra.mxu0 %v2103_v26  ;;  %1573 = vperm.xlu0 %2284, %v1397_v33  }
 0x1d6   : > { %2106 = vmatprep.subr.bf16.mxu0 %v2105_v41  ;;  %1440 = vperm.xlu1 %2286, %v1398_v28   ;;  %v1402_v41 = vld [vmem:[%s3453_s3 + $0x50] sm:$0xff] }
 0x1d8   : > { %1087 = vmatmul.mubr.f32.vlgmr.msra.gmra.mrb[0].mxu0 %v829_v17 }
 0x1d9   : > { %2108 = vmatpush1.bf16.msra.mxu0 %v2107_v37  ;;  %1092 = vmatprep.mubr.f32.mxu0 %v2432_v1  ;;  %v1401_v37 = vld [vmem:[%s3453_s3 + $0x48] sm:$0xff] }
 0x1da   : > { %2110 = vmatprep.subr.bf16.mxu0 %v2109_v50  ;;  %1577 = vperm.xlu0 %2284, %v1398_v28   ;;  %v1405_v50 = vld [vmem:[%s3453_s3 + $0x68] sm:$0xff] }
 0x1db   : > { %1445 = vperm.xlu1 %2286, %v1399_v10  }
 0x1dc   : > { %1093 = vmatmul.mubr.f32.gmra.mrb[2].mxu0 %v830_v8 }
 0x1dd   : > { %2112 = vmatpush1.bf16.msra.mxu0 %v2111_v58  ;;  %1098 = vmatprep.mubr.f32.mxu0 %v2432_v1  ;;  %v1404_v58 = vld [vmem:[%s3453_s3 + $0x60] sm:$0xff] }
 0x1de   : > { %2114 = vmatprep.subr.bf16.mxu0 %v2113_v56  ;;  %1581 = vperm.xlu0 %2284, %v1399_v10   ;;  %v840_v56 = vld [vmem:[#allocation5 + $0x108] sm:$0xff] }
 0x1df   : > { %1450 = vperm.xlu1 %2286, %v1400_v32  }
 0x1e0   : > { %1099 = vmatmul.mubr.f32.gmra.mrb[4].mxu0 %v831_v30 }
 0x1e1   : > { %2116 = vmatpush1.bf16.msra.mxu0 %v2115_v27  ;;  %1104 = vmatprep.mubr.f32.mxu0 %v2432_v1  ;;  %v839_v27 = vld [vmem:[#allocation5 + $0xf0] sm:$0xff] }
 0x1e2   : > { %2118 = vmatprep.subr.bf16.mxu0 %v2117_v62  ;;  %1585 = vperm.xlu0 %2284, %v1400_v32   ;;  %v1183_v62 = vld [vmem:[#allocation5 + $0x10] sm:$0xff] }
 0x1e3   : > { %1455 = vperm.xlu1 %2286, %v1401_v37  }
 0x1e4   : > { %1105 = vmatmul.mubr.f32.gmra.mrb[6].mxu0 %v832_v35 }
 0x1e5   : > { %2120 = vmatpush1.bf16.msra.mxu0 %v2119_v45  ;;  %1110 = vmatprep.mubr.f32.mxu0 %v2432_v1  ;;  %v843_v45 = vld [vmem:[#allocation5 + $0x150] sm:$0xff] }
 0x1e6   : > { %2122 = vmatprep.subr.bf16.mxu0 %v2121_v7  ;;  %1589 = vperm.xlu0 %2284, %v1401_v37   ;;  %v1189_v7 = vld [vmem:[#allocation5 + $0xa0] sm:$0xff] }
 0x1e7   : > { %1460 = vperm.xlu1 %2286, %v1402_v41  }
 0x1e8   : > { %1111 = vmatmul.mubr.f32.gmra.mrb[8].mxu0 %v833_v38 }
 0x1e9   : > { %2124 = vmatpush1.bf16.msra.mxu0 %v2123_v21  ;;  %1116 = vmatprep.mubr.f32.mxu0 %v2432_v1  ;;  %v1187_v21 = vld [vmem:[#allocation5 + $0x70] sm:$0xff] }
 0x1ea   : > { %2126 = vmatprep.subr.bf16.mxu0 %v2125_v60  ;;  %1593 = vperm.xlu0 %2284, %v1402_v41   ;;  %v1195_v60 = vld [vmem:[#allocation5 + $0x130] sm:$0xff] }
 0x1eb   : > { %1465 = vperm.xlu1 %2286, %v1403_v47  }
 0x1ec   : > { %1117 = vmatmul.mubr.f32.gmra.mrb[10].mxu0 %v834_v44 }
 0x1ed   : > { %2128 = vmatpush1.bf16.msra.mxu0 %v2127_v52  ;;  %1122 = vmatprep.mubr.f32.mxu0 %v2432_v1  ;;  %v1193_v52 = vld [vmem:[#allocation5 + $0x100] sm:$0xff] }
 0x1ee   : > { %2130 = vmatprep.subr.bf16.mxu0 %v2129_v9  ;;  %1597 = vperm.xlu0 %2284, %v1403_v47  }
 0x1ef   : > { %1470 = vperm.xlu1 %2286, %v1404_v58  }
 0x1f0   : > { %1123 = vmatmul.mubr.f32.gmra.mrb[12].mxu0 %v835_v46 }
 0x1f1   : > { %2132 = vmatpush1.bf16.msra.mxu0 %v2131_v19  ;;  %1128 = vmatprep.mubr.f32.mxu0 %v2432_v1 }
 0x1f2   : > { %2134 = vmatprep.subr.bf16.mxu0 %v2133_v42  ;;  %1601 = vperm.xlu0 %2284, %v1404_v58  }
 0x1f3   : > { %1475 = vperm.xlu1 %2286, %v1405_v50  }
 0x1f4   : > { %1129 = vmatmul.mubr.f32.gmra.mrb[14].mxu0 %v836_v49 }
 0x1f5   : > { %2136 = vmatpush1.bf16.msra.mxu0 %v2135_v24  ;;  %1134 = vmatprep.mubr.f32.mxu0 %v2432_v1 }
 0x1f6   : > { %1605 = vperm.xlu0 %2284, %v1405_v50  }
 0x1f7   : > { %1480 = vperm.xlu1 %2286, %v1406_v15  }
 0x1f8   : > { %1135 = vmatmul.mubr.f32.gmra.mrb[16].mxu0 %v837_v11 }
 0x1f9   : > { %1140 = vmatprep.mubr.f32.mxu0 %v2432_v1 }
 0x1fa   : > { %1613 = vperm.xlu0 %2284, %v1407_v0  }
 0x1fb   : > { %1485 = vperm.xlu1 %2286, %v1407_v0  }
 0x1fc   : > { %1141 = vmatmul.mubr.f32.gmra.mrb[18].mxu0 %v838_v53 }
 0x1fd   : > { %1146 = vmatprep.mubr.f32.mxu0 %v2432_v1 }
 0x1fe   : > { %2289 = vset.pattern.permute.xlu0 %v2436_v55 }
 0x1ff   : > { %2287 = vset.pattern.permute.xlu1 %v2435_v43 }
 0x200   : > { %1147 = vmatmul.mubr.f32.gmra.mrb[20].mxu0 %v839_v27  ;;  %1609 = vperm.xlu1 %2287, %v1406_v15  }
 0x201   : > { %1152 = vmatprep.mubr.f32.mxu0 %v2432_v1 }
 0x204   : > { %1153 = vmatmul.mubr.f32.gmra.mrb[22].mxu0 %v840_v56  ;;  %2288 = vset.pattern.permute.xlu1 %v2436_v55 }
 0x205   : > { %1158 = vmatprep.mubr.f32.mxu0 %v2432_v1  ;;  %1693 = vperm.xlu1 %2288, %v1690_v36  }
 0x208   : > { %1159 = vmatmul.mubr.f32.gmra.mrb[24].mxu0 %v841_v39 }
 0x209   : > { %1164 = vmatprep.mubr.f32.mxu0 %v2432_v1 }
 0x20c   : > { %1165 = vmatmul.mubr.f32.gmra.mrb[26].mxu0 %v842_v59 }
 0x20d   : > { %1170 = vmatprep.mubr.f32.mxu0 %v2432_v1 }
 0x210   : > { %1171 = vmatmul.mubr.f32.gmra.mrb[28].mxu0 %v843_v45 }
 0x211   : > { %1176 = vmatprep.mubr.f32.mxu0 %v2432_v1 }
 0x214   : > { %1177 = vmatmul.mubr.f32.gmra.mrb[30].mxu0 %v844_v61 }
 0x215   : > { %1263 = vmatprep.mubr.f32.mxu0 %v2432_v1 }
 0x218   : > { %1264 = vmatmul.mubr.f32.vlgmr.msra.gmra.mrb[0].mxu0 %v1183_v62 }
 0x219   : > { %1269 = vmatprep.mubr.f32.mxu0 %v2432_v1 }
 0x21c   : > { %1270 = vmatmul.mubr.f32.gmra.mrb[2].mxu0 %v1184_v3 }
 0x21d   : > { %1275 = vmatprep.mubr.f32.mxu0 %v2432_v1 }
 0x220   : > { %1276 = vmatmul.mubr.f32.gmra.mrb[4].mxu0 %v1185_v5 }
 0x221   : > { %1281 = vmatprep.mubr.f32.mxu0 %v2432_v1 }
 0x224   : > { %1282 = vmatmul.mubr.f32.gmra.mrb[6].mxu0 %v1186_v51 }
 0x225   : > { %1287 = vmatprep.mubr.f32.mxu0 %v2432_v1 }
 0x228   : > { %1288 = vmatmul.mubr.f32.gmra.mrb[8].mxu0 %v1187_v21 }
 0x229   : > { %1293 = vmatprep.mubr.f32.mxu0 %v2432_v1 }
 0x22c   : > { %1294 = vmatmul.mubr.f32.gmra.mrb[10].mxu0 %v1188_v6 }
 0x22d   : > { %1299 = vmatprep.mubr.f32.mxu0 %v2432_v1 }
 0x230   : > { %1300 = vmatmul.mubr.f32.gmra.mrb[12].mxu0 %v1189_v7 }
 0x231   : > { %1305 = vmatprep.mubr.f32.mxu0 %v2432_v1 }
 0x234   : > { %1306 = vmatmul.mubr.f32.gmra.mrb[14].mxu0 %v1190_v34 }
 0x235   : > { %1311 = vmatprep.mubr.f32.mxu0 %v2432_v1 }
 0x238   : > { %1312 = vmatmul.mubr.f32.gmra.mrb[16].mxu0 %v1191_v57  ;;  %v1411_v4 = vpop.permute.xlu0 %1410 }
 0x239   : > { %1317 = vmatprep.mubr.f32.mxu0 %v2432_v1  ;;  %v1421_v54 = vpop.permute.xlu1 %1420 }
 0x23c   : > { %1318 = vmatmul.mubr.f32.gmra.mrb[18].mxu0 %v1192_v48 }
 0x23d   : > { %1323 = vmatprep.mubr.f32.mxu0 %v2432_v1  ;;  %v1426_v33 = vpop.permute.xlu1 %1425 }
 0x23f   : > { %v1416_v17 = vpop.permute.xlu0 %1415 }
 0x240   : > { %1324 = vmatmul.mubr.f32.gmra.mrb[20].mxu0 %v1193_v52 }
 0x241   : > { %1329 = vmatprep.mubr.f32.mxu0 %v2432_v1 }
 0x242   : > { %v1558_v28 = vpop.permute.xlu1 %1557 }
 0x244   : > { %1330 = vmatmul.mubr.f32.gmra.mrb[22].mxu0 %v1194_v13  ;;  %v1554_v8 = vpop.permute.xlu0 %1553 }
 0x245   : > { %1335 = vmatprep.mubr.f32.mxu0 %v2432_v1 }
 0x248   : > { %1336 = vmatmul.mubr.f32.gmra.mrb[24].mxu0 %v1195_v60  ;;  %v1562_v30 = vpop.permute.xlu0 %1561 }
 0x249   : > { %1341 = vmatprep.mubr.f32.mxu0 %v2432_v1 }
 0x24c   : > { %1342 = vmatmul.mubr.f32.gmra.mrb[26].mxu0 %v1196_v23  ;;  %v1566_v35 = vpop.permute.xlu0 %1565 }
 0x24d   : > { %1347 = vmatprep.mubr.f32.mxu0 %v2432_v1  ;;  %v1431_v10 = vpop.permute.xlu1 %1430 }
 0x250   : > { %1348 = vmatmul.mubr.f32.gmra.mrb[28].mxu0 %v1197_v29  ;;  %v1570_v46 = vpop.permute.xlu0 %1569 }
 0x251   : > { %1353 = vmatprep.mubr.f32.mxu0 %v2432_v1  ;;  %v1436_v32 = vpop.permute.xlu1 %1435 }
 0x254   : > { %1354 = vmatmul.mubr.f32.gmra.mrb[30].mxu0 %v1198_v40  ;;  %v1574_v61 = vpop.permute.xlu0 %1573 }
 0x255   : > { %v3372_v44 = vpop.permute.xlu1 %1440 }
 0x25a   : > { %v3374_v27 = vpop.permute.xlu1 %1445 }
 0x25e   : > { %v3376_v13 = vpop.permute.xlu1 %1450 }
 0x284   : > { %v3340_v43 = vpop.f32.mrb[64].mxu1 }
 0x285   : > { %v3342_v19 = vpop.f32.mrb[65].mxu1 }
 0x288   : > { %v3344_v12 = vpop.f32.mrb[66].mxu1 }
 0x289   : > { %v3346_v9 = vpop.f32.mrb[67].mxu1 }
 0x28c   : > { %v3348_v20 = vpop.f32.mrb[68].mxu1 }
 0x28d   : > { %v3350_v22 = vpop.f32.mrb[69].mxu1 }
 0x290   : > { %v3352_v16 = vpop.f32.mrb[70].mxu1 }
 0x291   : > { %v3354_v18 = vpop.f32.mrb[71].mxu1 }
 0x295   : > { %v3356_v14 = vpop.f32.mrb[72].mxu1 }
 0x296   : > { %v3358_v1 = vpop.f32.mrb[73].mxu1 }
 0x299   : > { %v3360_v24 = vpop.f32.mrb[74].mxu1 }
 0x29a   : > { %v3362_v31 = vpop.f32.mrb[75].mxu1 }
 0x29d   : > { %v3364_v25 = vpop.f32.mrb[76].mxu1 }
 0x29e   : > { %v3366_v63 = vpop.f32.mrb[77].mxu1 }
 0x2a1   : > { %v3368_v42 = vpop.f32.mrb[78].mxu1 }
 0x2a2   : > { %v3370_v26 = vpop.f32.mrb[79].mxu1 }
 0x2eb   : > { %v1265_v37 = vpop.f32.mrb[0].mxu0 }
 0x2ec   : > { %v1488_v38 = vadd.f32 %v1411_v4, %v1265_v37  ;;  %v1267_v41 = vpop.f32.mrb[1].mxu0 }
 0x2ed   : > { %v1489_v47 = vadd.f32 %v1411_v4, %v1267_v41  ;;  %v1578_v4 = vpop.permute.xlu0 %1577 }
 0x2ee   : > { %v1520_v49 = vmax.f32 %v1488_v38, 0.0 }
 0x2ef   : > { %v1271_v58 = vpop.f32.mrb[2].mxu0  ;;  %v1521_v15 = vmax.f32 %v1489_v47, 0.0 }
 0x2f0   : > { %v1490_v50 = vadd.f32 %v1416_v17, %v1271_v58  ;;  %v1273_v11 = vpop.f32.mrb[3].mxu0  ;;  %v1616_v36 = vmul.f32 %v1554_v8, %v1520_v49 }
 0x2f1   : > { %v1491_v0 = vadd.f32 %v1416_v17, %v1273_v11  ;;  %v1617_v62 = vmul.f32 %v1554_v8, %v1521_v15 }
 0x2f2   : > { %v1522_v53 = vmax.f32 %v1490_v50, 0.0  ;;  %v1456_v50 = vpop.permute.xlu1 %1455 }
 0x2f3   : > { %v1523_v55 = vmax.f32 %v1491_v0, 0.0  ;;  %v1277_v56 = vpop.f32.mrb[4].mxu0 }
 0x2f4   : > { %v1618_v39 = vmul.f32 %v1558_v28, %v1522_v53  ;;  %v1492_v59 = vadd.f32 %v1421_v54, %v1277_v56  ;;  %v1279_v45 = vpop.f32.mrb[5].mxu0 }
 0x2f5   : > { %v1619_v3 = vmul.f32 %v1558_v28, %v1523_v55  ;;  %v1493_v5 = vadd.f32 %v1421_v54, %v1279_v45  ;;  %v1582_v55 = vpop.permute.xlu0 %1581 }
 0x2f6   : > { %v1648_v51 = vadd.f32 %v1618_v39, %v1616_v36  ;;  %v1524_v21 = vmax.f32 %v1492_v59, 0.0 }
 0x2f7   : > { %v1669_v6 = vadd.f32 %v1619_v3, %v1617_v62  ;;  %v1525_v7 = vmax.f32 %v1493_v5, 0.0  ;;  %v1283_v34 = vpop.f32.mrb[6].mxu0 }
 0x2f8   : > { %v1620_v57 = vmul.f32 %v1562_v30, %v1524_v21  ;;  %v1494_v48 = vadd.f32 %v1426_v33, %v1283_v34  ;;  %v1285_v52 = vpop.f32.mrb[7].mxu0 }
 0x2f9   : > { %v1621_v60 = vmul.f32 %v1562_v30, %v1525_v7  ;;  %v1495_v23 = vadd.f32 %v1426_v33, %v1285_v52 }
 0x2fa   : > { %v1649_v29 = vadd.f32 %v1648_v51, %v1620_v57  ;;  %v1526_v40 = vmax.f32 %v1494_v48, 0.0  ;;  %v1461_v51 = vpop.permute.xlu1 %1460  ;;  %v1586_v57 = vpop.permute.xlu0 %1585 }
 0x2fb   : > { %v1670_v17 = vadd.f32 %v1669_v6, %v1621_v60  ;;  %v1527_v37 = vmax.f32 %v1495_v23, 0.0  ;;  %v1289_v8 = vpop.f32.mrb[8].mxu0 }
 0x2fc   : > { %v1622_v28 = vmul.f32 %v1566_v35, %v1526_v40  ;;  %v1496_v54 = vadd.f32 %v1431_v10, %v1289_v8  ;;  %v1291_v38 = vpop.f32.mrb[9].mxu0 }
 0x2fd   : > { %v1623_v41 = vmul.f32 %v1566_v35, %v1527_v37  ;;  %v1497_v47 = vadd.f32 %v1431_v10, %v1291_v38 }
 0x2fe   : > { %v1650_v58 = vadd.f32 %v1649_v29, %v1622_v28  ;;  %v1528_v49 = vmax.f32 %v1496_v54, 0.0  ;;  %v1466_v8 = vpop.permute.xlu1 %1465 }
 0x2ff   : > { %v1671_v11 = vadd.f32 %v1670_v17, %v1623_v41  ;;  %v1529_v15 = vmax.f32 %v1497_v47, 0.0  ;;  %v1295_v0 = vpop.f32.mrb[10].mxu0  ;;  %v1590_v47 = vpop.permute.xlu0 %1589 }
 0x300   : > { %v1624_v53 = vmul.f32 %v1570_v46, %v1528_v49  ;;  %v1498_v30 = vadd.f32 %v1436_v32, %v1295_v0  ;;  %v1297_v33 = vpop.f32.mrb[11].mxu0 }
 0x301   : > { %v1625_v56 = vmul.f32 %v1570_v46, %v1529_v15  ;;  %v1499_v36 = vadd.f32 %v1436_v32, %v1297_v33 }
 0x302   : > { %v1651_v39 = vadd.f32 %v1650_v58, %v1624_v53  ;;  %v1530_v59 = vmax.f32 %v1498_v30, 0.0 }
 0x303   : > { %v1672_v45 = vadd.f32 %v1671_v11, %v1625_v56  ;;  %v1531_v62 = vmax.f32 %v1499_v36, 0.0  ;;  %v1301_v3 = vpop.f32.mrb[12].mxu0  ;;  %v1471_v56 = vpop.permute.xlu1 %1470 }
 0x304   : > { %v1626_v5 = vmul.f32 %v1574_v61, %v1530_v59  ;;  %v1500_v10 = vadd.f32 %v3372_v44, %v1301_v3  ;;  %v1303_v35 = vpop.f32.mrb[13].mxu0 }
 0x305   : > { %v1627_v21 = vmul.f32 %v1574_v61, %v1531_v62  ;;  %v1501_v6 = vadd.f32 %v3372_v44, %v1303_v35 }
 0x306   : > { %v1652_v7 = vadd.f32 %v1651_v39, %v1626_v5  ;;  %v1532_v34 = vmax.f32 %v1500_v10, 0.0 }
 0x307   : > { %v1673_v48 = vadd.f32 %v1672_v45, %v1627_v21  ;;  %v1533_v52 = vmax.f32 %v1501_v6, 0.0  ;;  %v1307_v46 = vpop.f32.mrb[14].mxu0 }
 0x308   : > { %v1628_v32 = vmul.f32 %v1578_v4, %v1532_v34  ;;  %v1502_v60 = vadd.f32 %v3374_v27, %v1307_v46  ;;  %v1309_v23 = vpop.f32.mrb[15].mxu0  ;;  %v1476_v34 = vpop.permute.xlu1 %1475 }
 0x309   : > { %v1629_v29 = vmul.f32 %v1578_v4, %v1533_v52  ;;  %v1503_v40 = vadd.f32 %v3374_v27, %v1309_v23 }
 0x30a   : > { %v1653_v17 = vadd.f32 %v1652_v7, %v1628_v32  ;;  %v1534_v37 = vmax.f32 %v1502_v60, 0.0 }
 0x30b   : > { %v1674_v28 = vadd.f32 %v1673_v48, %v1629_v29  ;;  %v1535_v61 = vmax.f32 %v1503_v40, 0.0  ;;  %v1313_v54 = vpop.f32.mrb[16].mxu0 }
 0x30c   : > { %v1630_v44 = vmul.f32 %v1582_v55, %v1534_v37  ;;  %v2153_v38 = vadd.f32 %v1313_v54, %v3340_v43  ;;  %v1315_v41 = vpop.f32.mrb[17].mxu0 }
 0x30d   : > { %v1631_v58 = vmul.f32 %v1582_v55, %v1535_v61  ;;  %v2154_v49 = vadd.f32 %v1315_v41, %v3342_v19  ;;  %v1594_v55 = vpop.permute.xlu0 %1593 }
 0x30e   : > { %v1654_v11 = vadd.f32 %v1653_v17, %v1630_v44  ;;  %v1504_v15 = vadd.f32 %v2153_v38, %v3376_v13  ;;  %v1481_v38 = vpop.permute.xlu1 %1480 }
 0x30f   : > { %v1675_v4 = vadd.f32 %v1674_v28, %v1631_v58  ;;  %v1505_v27 = vadd.f32 %v2154_v49, %v3376_v13  ;;  %v1319_v0 = vpop.f32.mrb[18].mxu0 }
 0x310   : > { %v1536_v53 = vmax.f32 %v1504_v15, 0.0  ;;  %v2155_v30 = vadd.f32 %v1319_v0, %v3344_v12  ;;  %v1321_v33 = vpop.f32.mrb[19].mxu0 }
 0x311   : > { %v1537_v36 = vmax.f32 %v1505_v27, 0.0  ;;  %v2156_v43 = vadd.f32 %v1321_v33, %v3346_v9  ;;  %v1598_v60 = vpop.permute.xlu0 %1597 }
 0x312   : > { %v1632_v39 = vmul.f32 %v1586_v57, %v1536_v53  ;;  %v1506_v59 = vadd.f32 %v2155_v30, %v1456_v50 }
 0x313   : > { %v1633_v45 = vmul.f32 %v1586_v57, %v1537_v36  ;;  %v1507_v19 = vadd.f32 %v2156_v43, %v1456_v50  ;;  %v1325_v62 = vpop.f32.mrb[20].mxu0 }
 0x314   : > { %v1655_v3 = vadd.f32 %v1654_v11, %v1632_v39  ;;  %v1538_v5 = vmax.f32 %v1506_v59, 0.0  ;;  %v2157_v10 = vadd.f32 %v1325_v62, %v3348_v20  ;;  %v1327_v13 = vpop.f32.mrb[21].mxu0  ;;  %v1486_v39 = vpop.permute.xlu1 %1485 }
 0x315   : > { %v1676_v35 = vadd.f32 %v1675_v4, %v1633_v45  ;;  %v1539_v21 = vmax.f32 %v1507_v19, 0.0  ;;  %v2158_v12 = vadd.f32 %v1327_v13, %v3350_v22  ;;  %v1602_v11 = vpop.permute.xlu0 %1601 }
 0x316   : > { %v1634_v6 = vmul.f32 %v1590_v47, %v1538_v5  ;;  %v1508_v7 = vadd.f32 %v2157_v10, %v1461_v51 }
 0x317   : > { %v1635_v48 = vmul.f32 %v1590_v47, %v1539_v21  ;;  %v1509_v9 = vadd.f32 %v2158_v12, %v1461_v51  ;;  %v1331_v52 = vpop.f32.mrb[22].mxu0 }
 0x318   : > { %v1656_v46 = vadd.f32 %v1655_v3, %v1634_v6  ;;  %v1540_v32 = vmax.f32 %v1508_v7, 0.0  ;;  %v2159_v50 = vadd.f32 %v1331_v52, %v3352_v16  ;;  %v1333_v57 = vpop.f32.mrb[23].mxu0  ;;  %v1610_v6 = vpop.permute.xlu1 %1609 }
 0x319   : > { %v1677_v23 = vadd.f32 %v1676_v35, %v1635_v48  ;;  %v1541_v29 = vmax.f32 %v1509_v9, 0.0  ;;  %v2160_v20 = vadd.f32 %v1333_v57, %v3354_v18  ;;  %v1606_v3 = vpop.permute.xlu0 %1605 }
 0x31a   : > { %v1636_v40 = vmul.f32 %v1594_v55, %v1540_v32  ;;  %v1510_v17 = vadd.f32 %v2159_v50, %v1466_v8 }
 0x31b   : > { %v1637_v37 = vmul.f32 %v1594_v55, %v1541_v29  ;;  %v1511_v22 = vadd.f32 %v2160_v20, %v1466_v8  ;;  %v1337_v28 = vpop.f32.mrb[24].mxu0 }
 0x31c   : > { %v1657_v61 = vadd.f32 %v1656_v46, %v1636_v40  ;;  %v1542_v54 = vmax.f32 %v1510_v17, 0.0  ;;  %v2161_v51 = vadd.f32 %v1337_v28, %v3356_v14  ;;  %v1339_v44 = vpop.f32.mrb[25].mxu0 }
 0x31d   : > { %v1678_v41 = vadd.f32 %v1677_v23, %v1637_v37  ;;  %v1543_v47 = vmax.f32 %v1511_v22, 0.0  ;;  %v2162_v16 = vadd.f32 %v1339_v44, %v3358_v1  ;;  %v1614_v29 = vpop.permute.xlu0 %1613 }
 0x31e   : > { %v1638_v58 = vmul.f32 %v1598_v60, %v1542_v54  ;;  %v1512_v49 = vadd.f32 %v2161_v51, %v1471_v56 }
 0x31f   : > { %v1639_v15 = vmul.f32 %v1598_v60, %v1543_v47  ;;  %v1513_v18 = vadd.f32 %v2162_v16, %v1471_v56  ;;  %v1343_v4 = vpop.f32.mrb[26].mxu0  ;;  %v1694_v16 = vpop.permute.xlu1 %1693 }
 0x320   : > { %v1658_v27 = vadd.f32 %v1657_v61, %v1638_v58  ;;  %v1544_v0 = vmax.f32 %v1512_v49, 0.0  ;;  %v2163_v8 = vadd.f32 %v1343_v4, %v3360_v24  ;;  %v1345_v53 = vpop.f32.mrb[27].mxu0 }
 0x321   : > { %v1679_v30 = vadd.f32 %v1678_v41, %v1639_v15  ;;  %v1545_v33 = vmax.f32 %v1513_v18, 0.0  ;;  %v2164_v14 = vadd.f32 %v1345_v53, %v3362_v31 }
 0x322   : > { %v1640_v36 = vmul.f32 %v1602_v11, %v1544_v0  ;;  %v1514_v43 = vadd.f32 %v2163_v8, %v1476_v34 }
 0x323   : > { %v1641_v59 = vmul.f32 %v1602_v11, %v1545_v33  ;;  %v1515_v1 = vadd.f32 %v2164_v14, %v1476_v34  ;;  %v1349_v55 = vpop.f32.mrb[28].mxu0  ;;  %v2437_v33 = vmov 1966171168  }
 0x324   : > { %v1659_v45 = vadd.f32 %v1658_v27, %v1640_v36  ;;  %v1546_v19 = vmax.f32 %v1514_v43, 0.0  ;;  %v2165_v56 = vadd.f32 %v1349_v55, %v3364_v25  ;;  %v1351_v62 = vpop.f32.mrb[29].mxu0  ;;  %v1714_v14 = vunpack.c.l.s4 %v2437_v33 }
 0x325   : > { %v1680_v5 = vadd.f32 %v1679_v30, %v1641_v59  ;;  %v1547_v10 = vmax.f32 %v1515_v1, 0.0  ;;  %v2166_v24 = vadd.f32 %v1351_v62, %v3366_v63 }
 0x326   : > { %v1642_v13 = vmul.f32 %v1606_v3, %v1546_v19  ;;  %v1516_v35 = vadd.f32 %v2165_v56, %v1481_v38  ;;  %v1715_v36 = vunpack.c.0.s8 %v1714_v14 }
 0x327   : > { %v1643_v21 = vmul.f32 %v1606_v3, %v1547_v10  ;;  %v1517_v31 = vadd.f32 %v2166_v24, %v1481_v38  ;;  %v1355_v12 = vpop.f32.mrb[30].mxu0 }
 0x328   : > { %v1548_v7 = vmax.f32 %v1516_v35, 0.0  ;;  %v2167_v34 = vadd.f32 %v1355_v12, %v3368_v42  ;;  %v1357_v48 = vpop.f32.mrb[31].mxu0  ;;  %v1660_v9 = vadd.f32 %v1659_v45, %v1642_v13  ;;  %v3470_v45 = vlaneseq }
 0x329   : > { %v1549_v52 = vmax.f32 %v1517_v31, 0.0  ;;  %v2168_v25 = vadd.f32 %v1357_v48, %v3370_v26  ;;  %v1681_v46 = vadd.f32 %v1680_v5, %v1643_v21 }
 0x32a   : > { %v1518_v32 = vadd.f32 %v2167_v34, %v1486_v39  ;;  %v1644_v50 = vmul.f32 %v1610_v6, %v1548_v7  ;;  %vm1730_vm0 = vcmp.lt.s32.totalorder %v3470_v45, 256 }
 0x32b   : > { %v1519_v57 = vadd.f32 %v2168_v25, %v1486_v39  ;;  %v1645_v60 = vmul.f32 %v1610_v6, %v1549_v52  ;;  %v1718_v39 = vsub.s32 %v1715_v36, %v2609_v2 }
 0x32c   : > { %v1550_v63 = vmax.f32 %v1518_v32, 0.0  ;;  %v1661_v23 = vadd.f32 %v1660_v9, %v1644_v50 }
 0x32d   : > { %v1551_v20 = vmax.f32 %v1519_v57, 0.0  ;;  %v1682_v40 = vadd.f32 %v1681_v46, %v1645_v60 }
 0x32e   : > { %v1646_v17 = vmul.f32 %v1614_v29, %v1550_v63 }
 0x32f   : > { %v1647_v37 = vmul.f32 %v1614_v29, %v1551_v20 }
 0x330   : > { %v1662_v22 = vadd.f32 %v1661_v23, %v1646_v17 }
 0x331   : > { %v1683_v28 = vadd.f32 %v1682_v40, %v1647_v37 }
 0x332   : > { %v1663_v42 = vrot.slane %v1662_v22, 4 }
 0x333   : > { %v1684_v61 = vrot.slane %v1683_v28, 4 }
 0x334   : > { %v1664_v54 = vadd.f32 %v1663_v42, %v1662_v22 }
 0x335   : > { %v1685_v51 = vadd.f32 %v1684_v61, %v1683_v28 }
 0x336   : > { %v1665_v44 = vrot.slane %v1664_v54, 2 }
 0x337   : > { %v1686_v26 = vrot.slane %v1685_v51, 2 }
 0x338   : > { %v1666_v38 = vadd.f32 %v1665_v44, %v1664_v54 }
 0x339   : > { %v1687_v41 = vadd.f32 %v1686_v26, %v1685_v51 }
 0x33a   : > { %v1667_v47 = vrot.slane %v1666_v38, 1 }
 0x33b   : > { %v1688_v58 = vrot.slane %v1687_v41, 1 }
 0x33c   : > { %v1668_v49 = vadd.f32 %v1667_v47, %v1666_v38 }
 0x33d   : > { %v1689_v11 = vadd.f32 %v1688_v58, %v1687_v41 }
 0x33e   : > { %v1696_v15 = vadd.f32 %v1694_v16, %v1668_v49 }
 0x33f   : > { %v1697_v18 = vadd.f32 %v1694_v16, %v1689_v11 }
 0x340   : > { %v1968_v4 = vmul.f32 -1.442695, %v1696_v15 }
 0x341   : > { %v1969_v27 = vmul.f32 -1.442695, %v1697_v18 }
 0x342   : > { %2290 = vpow2.f32 %v1968_v4 }
 0x343   : > { %2292 = vpow2.f32 %v1969_v27 }
 0x34c   : > { %v2291_v0 = vpop.eup %2290 }
 0x34d   : > { %v2293_v8 = vpop.eup %2292  ;;  %v1704_v53 = vadd.f32 1.0, %v2291_v0 }
 0x34e   : > { %v1705_v30 = vadd.f32 1.0, %v2293_v8 }
 0x34f   : > { %2294 = vrcp.f32 %v1704_v53 }
 0x350   : > { %2296 = vrcp.f32 %v1705_v30 }
 0x359   : > { %v2295_v43 = vpop.eup %2294 }
 0x35a   : > { %v2297_v59 = vpop.eup %2296 }
 0x35b   : > { %v1712_v1 = vcombine.low %v2295_v43, %v2297_v59 }
 0x35d   : > { %v1719_v55 = vrot.slane %v1712_v1, %v1718_v39 }
 0x35f   : > { %v1726_v19 = vrot.slane %v1719_v55, %v1718_v39 }
 0x361   : > { %1732 = vst.msk [vmem:[%s228_s29] sm:$0x3] %vm1730_vm0, %v1726_v19 }
 0x362   : > { %2369 = shalt.err (!%p2366_p7)
}
 0x363   : > { %s2370_s25 = scalar_lea.hbm %s3407_s6, 32  ;;  %s2374_s13 = scalar_lea.hbm %s3454_s4, 128 }
 0x364   : > { %p2371_p9 = scmp.ne.s32.totalorder %s3407_s6, %s2370_s25  ;;  %p2375_p0 = scmp.lt.u32.totalorder %s3407_s6, %s3454_s4 }
 0x365   : > { %p2376_p10 = scmp.lt.u32.totalorder %s2374_s13, %s2370_s25  ;;  %p2378_p1 = scmp.lt.u32.totalorder %s2370_s25, %s3407_s6 }
 0x366   : > { %p2372_p11 = pnand %p2371_p9, %p2547_p12 }
 0x367   : > { %p2377_p2 = por %p2376_p10, %p2375_p0 }
 0x368   : > { %p2373_p5 = pneg %p2372_p11 }
 0x369   : > { %p2379_p4 = por %p2378_p1, %p2377_p2 }
 0x36b   : > { %p2380_p6 = pnand %p2379_p4, %p2373_p5 }
 0x36d   : > { %2383 = shalt.err (!%p2380_p6)
}
 0x36e   : > { %2223 = dma.vmem_to_hbm [thread:$0]  (%p2547_p12), %s3409_s10, 32, %s3407_s6, %s1734_s5  }
 0x36f PF: > { %p2240_p8 = scmp.ge.s32.totalorder %s2426_s18, 2  ;;  %s1760_s9 = sand.u32 1, %s2414_s15  }
 0x370   : > { %p3471_p13 = scmp.ne.s32.totalorder %s3460_s22, 0  ;;  %s1761_s28 = scalar_lea.sflag [#allocation4], %s1760_s9 }
 0x372   : > { %p2234_p3 = pnand %p2240_p8, %p3471_p13 }
 0x374   : > { %2409 = dma.done.wait (!%p2234_p3), %s1761_s28, 32  }
 0x375   : > { %2411 = vsyncadd (!%p2234_p3), %s1761_s28, 4294967264  ;;  %p18_p7 = scmp.ge.s32.totalorder %s2517_s27, 6   ;;  %s3472_s15 = smov %s2418_s16 }
 0x376   : > { %s3473_s16 = smov %s2422_s17  ;;  %s3474_s17 = smov %s2543_s24 }
 0x377   : > { %s3475_s18 = smov %s2517_s27  ;;  %20 = sbr.rel (!%p18_p7) target bundleno = 6 (0x6), region = 86 }
 0x37e   :  { %1766 = vsyncpa [#allocation3], 1 }
 0x37f   :  { %1768 = vsyncpa [#allocation3 + $0x1], 1 }
 0x380   :  { %1769 = vsyncpa [#allocation6], 1 }
 0x381   :  { %1770 = vsyncpa [#allocation4], 1 }
 0x382   :  { %1772 = vsyncpa [#allocation4 + $0x1], 1 }

</bundles_post_ra>
